<compile_context>
chip_gen: v7x
topology: tpu7x:2x2x1
jax: 0.10.0
libtpu: 0.0.40
codegen_flags: <defaults>
</compile_context>

<pallas_src>
import functools
import math
import numpy as np

import jax
import jax.numpy as jnp
from jax.experimental import pallas as pl
from jax.experimental.pallas import tpu as pltpu


# Fallback threshold for the folded top-down interpolation matrix.
_KBD_MAX_BYTES = 8 * 1024 * 1024


# --------------------------------------------------------------------------
# Tiling helper: lane-axis tile (multiple of 128, "parallel" across cores).
# --------------------------------------------------------------------------
def _pick_tile(n):
    if n > 256 and n % 256 == 0:
        return 256
    return n


# --------------------------------------------------------------------------
# Pallas kernel 1: act(W @ X + b), channel-major (output rows = channels,
# output lanes = flattened spatial -> lane-dense stores).
# --------------------------------------------------------------------------
def _mm_kernel(w_ref, x_ref, b_ref, o_ref, *, act):
    y = jnp.dot(w_ref[...], x_ref[...], preferred_element_type=jnp.float32)
    y = y + b_ref[...]                                  # [M,1] broadcast
    if act == "leaky":                                  # LeakyReLU slope 0.01
        y = jnp.where(y >= 0, y, 0.01 * y)
    elif act == "tanh":
        y = jnp.tanh(y)
    elif act == "sigmoid":
        y = 1.0 / (1.0 + jnp.exp(-y))                   # exact sigmoid (EUP)
    o_ref[...] = y


def mm_bias_act(w, x, b_col, act="none"):
    """w:[M,K]  x:[K,N]  b_col:[M,1]  ->  act(w @ x + b): [M,N]."""
    M, K = w.shape
    N = x.shape[1]
    TN = _pick_tile(N)
    return pl.pallas_call(
        functools.partial(_mm_kernel, act=act),
        out_shape=jax.ShapeDtypeStruct((M, N), jnp.float32),
        grid=(N // TN,),
        in_specs=[pl.BlockSpec((M, K), lambda i: (0, 0)),
                  pl.BlockSpec((K, TN), lambda i: (0, i)),
                  pl.BlockSpec((M, 1), lambda i: (0, 0))],
        out_specs=pl.BlockSpec((M, TN), lambda i: (0, i)),
        compiler_params=pltpu.CompilerParams(
            dimension_semantics=("parallel",)),
    )(w, x, b_col)


# --------------------------------------------------------------------------
# Pallas kernel 2a: fused lateral + top-down + residual tanh update.
#   out = cur + tanh(Wbu @ bu + (Wtd @ up) @ Kbd + sx*gx + sy*gy + b)
#   `up` is the COARSE upper layer; Kbd = kron(I_B, kron(M,M).T) performs the
#   bilinear upsample (Wtd commutes with the spatial interpolation).
# --------------------------------------------------------------------------
def _update_td_kernel(bu_ref, up_ref, kbd_ref, gx_ref, gy_ref, cur_ref,
                      wbu_ref, wtd_ref, sx_ref, sy_ref, b_ref, o_ref):
    y = jnp.dot(wbu_ref[...], bu_ref[...], preferred_element_type=jnp.float32)
    z = jnp.dot(wtd_ref[...], up_ref[...], preferred_element_type=jnp.float32)
    y = y + jnp.dot(z, kbd_ref[...], preferred_element_type=jnp.float32)
    y = y + sx_ref[...] * gx_ref[...]       # rank-1 folded sobel-x
    y = y + sy_ref[...] * gy_ref[...]       # rank-1 folded sobel-y
    y = y + b_ref[...]
    o_ref[...] = cur_ref[...] + jnp.tanh(y)


def fused_update_td(bu, up, kbd, gx, gy, cur, wbu, wtd, sx, sy, b):
    """bu/cur:[hid,N]  up:[hid,Nin]  kbd:[Nin,N]  gx/gy:[1,N]."""
    H, N = cur.shape
    Nin = up.shape[1]
    TN = _pick_tile(N)
    data_spec = pl.BlockSpec((H, TN), lambda i: (0, i))
    row_spec = pl.BlockSpec((1, TN), lambda i: (0, i))
    w_spec = pl.BlockSpec((H, H), lambda i: (0, 0))
    c_spec = pl.BlockSpec((H, 1), lambda i: (0, 0))
    return pl.pallas_call(
        _update_td_kernel,
        out_shape=jax.ShapeDtypeStruct((H, N), jnp.float32),
        grid=(N // TN,),
        in_specs=[data_spec,
                  pl.BlockSpec((H, Nin), lambda i: (0, 0)),
                  pl.BlockSpec((Nin, TN), lambda i: (0, i)),
                  row_spec, row_spec, data_spec,
                  w_spec, w_spec, c_spec, c_spec, c_spec],
        out_specs=data_spec,
        compiler_params=pltpu.CompilerParams(
            dimension_semantics=("parallel",)),
    )(bu, up, kbd, gx, gy, cur, wbu, wtd, sx, sy, b)


# --------------------------------------------------------------------------
# Pallas kernel 2b: fused update with an already-materialized top-down tensor
# (top layer where td == 0, or fallback when Kbd would be too big).
#   out = cur + tanh(Wbu @ bu + Wtd @ td + sx*gx + sy*gy + b)
# --------------------------------------------------------------------------
def _update_kernel(bu_ref, td_ref, gx_ref, gy_ref, cur_ref,
                   wbu_ref, wtd_ref, sx_ref, sy_ref, b_ref, o_ref):
    y = jnp.dot(wbu_ref[...], bu_ref[...], preferred_element_type=jnp.float32)
    y = y + jnp.dot(wtd_ref[...], td_ref[...],
                    preferred_element_type=jnp.float32)
    y = y + sx_ref[...] * gx_ref[...]
    y = y + sy_ref[...] * gy_ref[...]
    y = y + b_ref[...]
    o_ref[...] = cur_ref[...] + jnp.tanh(y)


def fused_update(bu, td, gx, gy, cur, wbu, wtd, sx, sy, b):
    H, N = cur.shape
    TN = _pick_tile(N)
    data_spec = pl.BlockSpec((H, TN), lambda i: (0, i))
    row_spec = pl.BlockSpec((1, TN), lambda i: (0, i))
    w_spec = pl.BlockSpec((H, H), lambda i: (0, 0))
    c_spec = pl.BlockSpec((H, 1), lambda i: (0, 0))
    return pl.pallas_call(
        _update_kernel,
        out_shape=jax.ShapeDtypeStruct((H, N), jnp.float32),
        grid=(N // TN,),
        in_specs=[data_spec, data_spec, row_spec, row_spec, data_spec,
                  w_spec, w_spec, c_spec, c_spec, c_spec],
        out_specs=data_spec,
        compiler_params=pltpu.CompilerParams(
            dimension_semantics=("parallel",)),
    )(bu, td, gx, gy, cur, wbu, wtd, sx, sy, b)


# --------------------------------------------------------------------------
# Glue ops (XLA, fused inside the whole-forward jit).
# --------------------------------------------------------------------------
def conv2d_cmajor(x, w_flat, b_col, ksize, pad, act="none"):
    """x:[Cin,B,H,W]  w_flat:[Cout,K*K*Cin]  b_col:[Cout,1]  (stride 1)."""
    Cin, B, H, W = x.shape
    Cout = w_flat.shape[0]
    xp = jnp.pad(x, ((0, 0), (0, 0), (pad, pad), (pad, pad)))
    Ho = H + 2 * pad - ksize + 1
    Wo = W + 2 * pad - ksize + 1
    rows = []
    for dy in range(ksize):
        for dx in range(ksize):
            rows.append(xp[:, :, dy:dy + Ho, dx:dx + Wo]
                        .reshape(Cin, B * Ho * Wo))
    patches = jnp.concatenate(rows, axis=0)              # [K*K*Cin, N]
    out = mm_bias_act(w_flat, patches, b_col, act=act)   # [Cout, N] lane-dense
    return out.reshape(Cout, B, Ho, Wo)


def maxpool2_cmajor(x):
    """nn.MaxPool2d(2) on [C,B,H,W] (even H,W) — plain VPU max in the glue."""
    a = x[:, :, 0::2, 0::2]
    b = x[:, :, 0::2, 1::2]
    c = x[:, :, 1::2, 0::2]
    d = x[:, :, 1::2, 1::2]
    return jnp.maximum(jnp.maximum(a, b), jnp.maximum(c, d))


def sobel_grads_cmajor(cur):
    """Folded Sobel laterals.  cur:[hid,B,r,r] -> gx,gy:[1, B*r*r].

    Every (out,in) pair of the expanded sobel kernel is the same 3x3 stencil,
    so xgrad[co] = sobelx(channel_sum(cur)) for every co (exact up to f32
    reassociation)."""
    csum = jnp.sum(cur, axis=0)                          # [B, r, r]
    B, r = csum.shape[0], csum.shape[1]
    cp = jnp.pad(csum, ((0, 0), (1, 1), (1, 1)))

    def tap(dy, dx):
        return cp[:, dy:dy + r, dx:dx + r]

    # sobelx = [[1,0,-1],[2,0,-2],[1,0,-1]],  sobely = sobelx.T
    gx = (tap(0, 0) - tap(0, 2) + 2.0 * tap(1, 0) - 2.0 * tap(1, 2)
          + tap(2, 0) - tap(2, 2))
    gy = (tap(0, 0) + 2.0 * tap(0, 1) + tap(0, 2)
          - tap(2, 0) - 2.0 * tap(2, 1) - tap(2, 2))
    return gx.reshape(1, B * r * r), gy.reshape(1, B * r * r)


def _bilinear_matrix(r_out, r_in):
    """1-D interp matrix matching F.interpolate(bilinear, align_corners=False)."""
    M = np.zeros((r_out, r_in), dtype=np.float32)
    scale = r_in / r_out
    for i in range(r_out):
        src = max((i + 0.5) * scale - 0.5, 0.0)
        i0 = min(int(np.floor(src)), r_in - 1)
        i1 = min(i0 + 1, r_in - 1)
        w1 = src - i0
        M[i, i0] += 1.0 - w1
        M[i, i1] += w1
    return M


# --------------------------------------------------------------------------
# Parameters (deterministic synthetic init; shapes follow Destiller.__init__).
# Sobel kernels are not stored: they are folded into the update (sx/sy sums).
# --------------------------------------------------------------------------
def make_params(in_dim, hid_dim, in_kernel, key):
    keys = jax.random.split(key, 10)

    def conv_w_flat(k, cout, cin, ks):
        w = jax.random.normal(k, (cout, cin, ks, ks), jnp.float32)
        w = w * (1.0 / math.sqrt(cin * ks * ks))
        # [Cout,Cin,K,K] -> [Cout, (dy*K+dx)*Cin + ci]
        return jnp.transpose(w, (0, 2, 3, 1)).reshape(cout, ks * ks * cin)

    def bias_col(k, c):
        return jax.random.normal(k, (c, 1), jnp.float32) * 0.01

    p = {}
    p["inconv_w"] = conv_w_flat(keys[0], hid_dim, in_dim, in_kernel)
    p["inconv_b"] = bias_col(keys[1], hid_dim)
    p["outconv_w"] = conv_w_flat(keys[2], in_dim, hid_dim, in_kernel)
    p["outconv_b"] = bias_col(keys[3], in_dim)
    p["upconv_w"] = conv_w_flat(keys[4], hid_dim, hid_dim, 3)
    p["upconv_b"] = bias_col(keys[5], hid_dim)

    def update_blocks(kw, kb):
        # Conv2d(4*hid, hid, 1) weight as [hid, 4*hid]; split into the four
        # influence blocks (bottom_up, top_down, xgrad, ygrad).  The grad
        # blocks are pre-reduced to column sums (rank-1 folded sobel path).
        U = (jax.random.normal(kw, (hid_dim, 4 * hid_dim), jnp.float32)
             * (1.0 / math.sqrt(4 * hid_dim)))
        h = hid_dim
        return (U[:, 0:h], U[:, h:2 * h],
                jnp.sum(U[:, 2 * h:3 * h], axis=1, keepdims=True),
                jnp.sum(U[:, 3 * h:4 * h], axis=1, keepdims=True),
                bias_col(kb, hid_dim))

    (p["enc_wbu"], p["enc_wtd"], p["enc_sx"], p["enc_sy"],
     p["enc_b"]) = update_blocks(keys[6], keys[7])
    (p["dec_wbu"], p["dec_wtd"], p["dec_sx"], p["dec_sy"],
     p["dec_b"]) = update_blocks(keys[8], keys[9])
    return p


# --------------------------------------------------------------------------
# Destiller forward (excite=False path of the reference).
# --------------------------------------------------------------------------
class DestillerPallas:
    def __init__(self, in_dim, hid_dim, in_kernel, hid_kernel, width=32,
                 key=None):
        self.in_dim = in_dim
        self.hid_dim = hid_dim
        self.in_kernel = in_kernel
        self.hid_kernel = hid_kernel   # only used by excite(); unused here
        self.width = width
        self.depth = int(math.log2(width)) + 1
        self.resolutions = [2 ** i for i in range(self.depth) if i != 1][::-1]
        self.params = make_params(in_dim, hid_dim, in_kernel, key)

        # Caches for interpolation matrices (built lazily at trace time —
        # they are static constants for a given (batch, resolution) pair).
        self._kbd_cache = {}
        self._k2t_cache = {}

        # Whole forward compiled as ONE XLA program.
        self._jit_forward = jax.jit(self._forward_impl)

    # -- interpolation matrices --------------------------------------------
    def _get_kbd(self, B, r_out, r_in):
        """Batch-block-diag bilinear matrix: [B*r_in^2, B*r_out^2]."""
        key = (B, r_out, r_in)
        if key not in self._kbd_cache:
            M = _bilinear_matrix(r_out, r_in)
            k2t = np.kron(M, M).T.astype(np.float32)     # [r_in^2, r_out^2]
            kbd = np.kron(np.eye(B, dtype=np.float32), k2t)
            self._kbd_cache[key] = jnp.asarray(kbd, jnp.float32)
        return self._kbd_cache[key]

    def _bilinear_up(self, upper, r_out):
        """Fallback: standalone bilinear upsample as a lane-dense matmul."""
        hid, B, r_in, _ = upper.shape
        if r_in == 1:
            # 1x1 -> r_out x r_out bilinear is an exact broadcast.
            return jnp.broadcast_to(upper, (hid, B, r_out, r_out))
        key = (r_out, r_in)
        if key not in self._k2t_cache:
            M = _bilinear_matrix(r_out, r_in)
            self._k2t_cache[key] = jnp.asarray(np.kron(M, M).T, jnp.float32)
        k2t = self._k2t_cache[key]                       # [r_in^2, r_out^2]
        xdata = upper.reshape(hid * B, r_in * r_in)
        zb = jnp.zeros((hid * B, 1), jnp.float32)
        out = mm_bias_act(xdata, k2t, zb, act="none")    # [hid*B, r_out^2]
        return out.reshape(hid, B, r_out, r_out)

    # -- one propagate pass (3 reps over all layers) -------------------------
    def _propagate(self, params, mode, stimulus=None, actis=None, n_reps=3):
        hid = self.hid_dim
        res = self.resolutions
        depth = len(res)
        if mode == "encode":
            wbu, wtd = params["enc_wbu"], params["enc_wtd"]
            sx, sy, bup = params["enc_sx"], params["enc_sy"], params["enc_b"]
            direction = 1
        else:
            wbu, wtd = params["dec_wbu"], params["dec_wtd"]
            sx, sy, bup = params["dec_sx"], params["dec_sy"], params["dec_b"]
            direction = -1

        if actis is None:
            B = stimulus.shape[1]
            actis = [jnp.zeros((hid, B, r, r), jnp.float32) for r in res]
        else:
            B = actis[0].shape[1]
            actis = list(actis)
        order = list(range(depth))[::direction]

        # Layer-0 bottom-up is rep-invariant -> hoist (exact).
        if stimulus is not None:
            bu0 = conv2d_cmajor(stimulus, params["inconv_w"],
                                params["inconv_b"], self.in_kernel,
                                self.in_kernel // 2, act="none")
        else:
            bu0 = jnp.zeros((hid, B, self.width, self.width), jnp.float32)

        for _rep in range(n_reps):
            for li in order:
                r = res[li]
                cur = actis[li]
                N = B * r * r
                # ---- bottom-up: upconv(3x3) + LeakyReLU + MaxPool2d(2) ----
                if li == 0:
                    bu = bu0
                else:
                    lower = actis[li - 1]
                    pad = 0 if res[li - 1] == 4 else 1
                    y = conv2d_cmajor(lower, params["upconv_w"],
                                      params["upconv_b"], 3, pad, act="leaky")
                    bu = maxpool2_cmajor(y)
                # ---- lateral: folded Sobel gradients ----------------------
                gx, gy = sobel_grads_cmajor(cur)
                bu2 = bu.reshape(hid, N)
                cur2 = cur.reshape(hid, N)
                # ---- top-down + fused residual 1x1-conv + tanh update -----
                if li == depth - 1:
                    # top layer: top_down == 0 (reference zeros_like).
                    td = jnp.zeros((hid, N), jnp.float32)
                    new = fused_update(bu2, td, gx, gy, cur2,
                                       wbu, wtd, sx, sy, bup)
                else:
                    r_in = res[li + 1]
                    Nin = B * r_in * r_in
                    if 4 * Nin * N <= _KBD_MAX_BYTES:
                        # Fold bilinear(align_corners=False) into the update:
                        # Wtd @ interp(up) == interp(Wtd @ up)  (linear maps
                        # on disjoint axes commute) -> one Pallas call/layer.
                        kbd = self._get_kbd(B, r, r_in)
                        up2 = actis[li + 1].reshape(hid, Nin)
                        new = fused_update_td(bu2, up2, kbd, gx, gy, cur2,
                                              wbu, wtd, sx, sy, bup)
                    else:
                        td = self._bilinear_up(actis[li + 1], r)
                        new = fused_update(bu2, td.reshape(hid, N), gx, gy,
                                           cur2, wbu, wtd, sx, sy, bup)
                actis[li] = new.reshape(hid, B, r, r)
        # TODO(synk): reference gates encode outputs on global `args.max` /
        # `args.softmax`; no `args` object exists, assumed False here.
        return actis

    # -- full forward (traced under jit) --------------------------------------
    def _forward_impl(self, params, x_nchw):
        x = jnp.transpose(x_nchw, (1, 0, 2, 3)).astype(jnp.float32)  # [C,B,H,W]
        destill = self._propagate(params, mode="encode", stimulus=x)
        relax = self._propagate(params, mode="decode", actis=destill)
        recon = conv2d_cmajor(relax[0], params["outconv_w"],
                              params["outconv_b"], self.in_kernel,
                              self.in_kernel // 2, act="sigmoid")
        to_nchw = lambda t: jnp.transpose(t, (1, 0, 2, 3))
        return (to_nchw(recon),
                [to_nchw(a) for a in destill],
                [to_nchw(a) for a in relax])

    def forward(self, x_nchw, excite=False):
        # TODO(synk): excite()/parse() paths unused for forward(excite=False).
        recon, destill, relax = self._jit_forward(self.params, x_nchw)
        return recon, None, destill, relax


# --------------------------------------------------------------------------
if __name__ == "__main__":
    key = jax.random.PRNGKey(0)
    k_in, k_params = jax.random.split(key)

    B, in_dim, width = 2, 3, 16
    hid_dim, in_kernel, hid_kernel = 8, 3, 3

    x = jax.random.normal(k_in, (B, in_dim, width, width), jnp.float32)

    model = DestillerPallas(in_dim, hid_dim, in_kernel, hid_kernel,
                            width=width, key=k_params)
    recon, excitation, destill, relax = model.forward(x)

    jax.block_until_ready(recon)
    for a in destill + relax:
        jax.block_until_ready(a)

    assert recon.shape == (B, in_dim, width, width)
    assert recon.dtype == jnp.float32
    assert len(destill) == len(model.resolutions)
    assert len(relax) == len(model.resolutions)
    assert bool(jnp.all(jnp.isfinite(recon)))
    print("KERNEL_OK")
</pallas_src>

<mosaic_0001>
module attributes {stable_mosaic.version = 11 : i64} {
  func.func @_mm_kernel(%arg0: i32, %arg1: memref<8x27xf32, #tpu.memory_space<vmem>>, %arg2: memref<27x256xf32, #tpu.memory_space<vmem>>, %arg3: memref<8x1xf32, #tpu.memory_space<vmem>>, %arg4: memref<8x256xf32, #tpu.memory_space<vmem>>) attributes {dimension_semantics = [#tpu.dimension_semantics<parallel>], iteration_bounds = array<i64: 2>, scalar_prefetch = 0 : i64, scratch_operands = 0 : i64, tpu.core_type = #tpu.core_type<tc>, window_params = [{pipeline_mode = #tpu.pipeline_mode<synchronous>, transform_indices = @transform_0, window_bounds = array<i64: 8, 27>}, {transform_indices = @transform_1, window_bounds = array<i64: 27, 256>}, {pipeline_mode = #tpu.pipeline_mode<synchronous>, transform_indices = @transform_2, window_bounds = array<i64: 8, 1>}, {transform_indices = @transform_3, window_bounds = array<i64: 8, 256>}]} {
    %c0 = arith.constant 0 : index
    %c0_0 = arith.constant 0 : index
    %0 = vector.load %arg1[%c0, %c0_0] : memref<8x27xf32, #tpu.memory_space<vmem>>, vector<8x27xf32>
    %c0_1 = arith.constant 0 : index
    %c0_2 = arith.constant 0 : index
    %1 = vector.load %arg2[%c0_1, %c0_2] : memref<27x256xf32, #tpu.memory_space<vmem>>, vector<27x256xf32>
    %cst = arith.constant dense<0.000000e+00> : vector<8x256xf32>
    %2 = tpu.matmul %0, %1, %cst {dimension_numbers = #tpu.dot_dimension_numbers<[1], [0], [0], [1], [0, 0, 1, 1], [], []>} : vector<8x27xf32>, vector<27x256xf32>, vector<8x256xf32> -> vector<8x256xf32>
    %c0_3 = arith.constant 0 : index
    %c0_4 = arith.constant 0 : index
    %3 = vector.load %arg3[%c0_3, %c0_4] : memref<8x1xf32, #tpu.memory_space<vmem>>, vector<8x1xf32>
    %4 = vector.broadcast %3 : vector<8x1xf32> to vector<8x256xf32>
    %5 = arith.addf %2, %4 : vector<8x256xf32>
    %c0_5 = arith.constant 0 : index
    %c0_6 = arith.constant 0 : index
    %6 = vector.load %arg4[%c0_5, %c0_6] : memref<8x256xf32, #tpu.memory_space<vmem>>, vector<8x256xf32>
    tpu.vector_store %arg4[%c0_5, %c0_6], %5 {strides = array<i32>} : memref<8x256xf32, #tpu.memory_space<vmem>>, vector<8x256xf32>,
    return
  }
  func.func @transform_0(%arg0: i32) -> (i32, i32) {
    %c0_i32 = arith.constant 0 : i32
    %c0_i32_0 = arith.constant 0 : i32
    %c0_i32_1 = arith.constant 0 : i32
    return %c0_i32, %c0_i32_0 : i32, i32
  }
  func.func @transform_1(%arg0: i32) -> (i32, i32) {
    %c0_i32 = arith.constant 0 : i32
    %c0_i32_0 = arith.constant 0 : i32
    return %c0_i32, %arg0 : i32, i32
  }
  func.func @transform_2(%arg0: i32) -> (i32, i32) {
    %c0_i32 = arith.constant 0 : i32
    %c0_i32_0 = arith.constant 0 : i32
    %c0_i32_1 = arith.constant 0 : i32
    return %c0_i32, %c0_i32_0 : i32, i32
  }
  func.func @transform_3(%arg0: i32) -> (i32, i32) {
    %c0_i32 = arith.constant 0 : i32
    %c0_i32_0 = arith.constant 0 : i32
    return %c0_i32, %arg0 : i32, i32
  }
}

module attributes {stable_mosaic.version = 11 : i64} {
  func.func @_update_td_kernel(%arg0: i32, %arg1: memref<8x256xf32, #tpu.memory_space<vmem>>, %arg2: memref<8x128xf32, #tpu.memory_space<vmem>>, %arg3: memref<128x256xf32, #tpu.memory_space<vmem>>, %arg4: memref<1x256xf32, #tpu.memory_space<vmem>>, %arg5: memref<1x256xf32, #tpu.memory_space<vmem>>, %arg6: memref<8x256xf32, #tpu.memory_space<vmem>>, %arg7: memref<8x8xf32, #tpu.memory_space<vmem>>, %arg8: memref<8x8xf32, #tpu.memory_space<vmem>>, %arg9: memref<8x1xf32, #tpu.memory_space<vmem>>, %arg10: memref<8x1xf32, #tpu.memory_space<vmem>>, %arg11: memref<8x1xf32, #tpu.memory_space<vmem>>, %arg12: memref<8x256xf32, #tpu.memory_space<vmem>>) attributes {dimension_semantics = [#tpu.dimension_semantics<parallel>], iteration_bounds = array<i64: 2>, scalar_prefetch = 0 : i64, scratch_operands = 0 : i64, tpu.core_type = #tpu.core_type<tc>, window_params = [{transform_indices = @transform_0, window_bounds = array<i64: 8, 256>}, {pipeline_mode = #tpu.pipeline_mode<synchronous>, transform_indices = @transform_1, window_bounds = array<i64: 8, 128>}, {transform_indices = @transform_2, window_bounds = array<i64: 128, 256>}, {transform_indices = @transform_3, window_bounds = array<i64: 1, 256>}, {transform_indices = @transform_4, window_bounds = array<i64: 1, 256>}, {transform_indices = @transform_5, window_bounds = array<i64: 8, 256>}, {pipeline_mode = #tpu.pipeline_mode<synchronous>, transform_indices = @transform_6, window_bounds = array<i64: 8, 8>}, {pipeline_mode = #tpu.pipeline_mode<synchronous>, transform_indices = @transform_7, window_bounds = array<i64: 8, 8>}, {pipeline_mode = #tpu.pipeline_mode<synchronous>, transform_indices = @transform_8, window_bounds = array<i64: 8, 1>}, {pipeline_mode = #tpu.pipeline_mode<synchronous>, transform_indices = @transform_9, window_bounds = array<i64: 8, 1>}, {pipeline_mode = #tpu.pipeline_mode<synchronous>, transform_indices = @transform_10, window_bounds = array<i64: 8, 1>}, {transform_indices = @transform_11, window_bounds = array<i64: 8, 256>}]} {
    %c0 = arith.constant 0 : index
    %c0_0 = arith.constant 0 : index
    %0 = vector.load %arg7[%c0, %c0_0] : memref<8x8xf32, #tpu.memory_space<vmem>>, vector<8x8xf32>
    %c0_1 = arith.constant 0 : index
    %c0_2 = arith.constant 0 : index
    %1 = vector.load %arg1[%c0_1, %c0_2] : memref<8x256xf32, #tpu.memory_space<vmem>>, vector<8x256xf32>
    %cst = arith.constant dense<0.000000e+00> : vector<8x256xf32>
    %2 = tpu.matmul %0, %1, %cst {dimension_numbers = #tpu.dot_dimension_numbers<[1], [0], [0], [1], [0, 0, 1, 1], [], []>} : vector<8x8xf32>, vector<8x256xf32>, vector<8x256xf32> -> vector<8x256xf32>
    %c0_3 = arith.constant 0 : index
    %c0_4 = arith.constant 0 : index
    %3 = vector.load %arg8[%c0_3, %c0_4] : memref<8x8xf32, #tpu.memory_space<vmem>>, vector<8x8xf32>
    %c0_5 = arith.constant 0 : index
    %c0_6 = arith.constant 0 : index
    %4 = vector.load %arg2[%c0_5, %c0_6] : memref<8x128xf32, #tpu.memory_space<vmem>>, vector<8x128xf32>
    %cst_7 = arith.constant dense<0.000000e+00> : vector<8x128xf32>
    %5 = tpu.matmul %3, %4, %cst_7 {dimension_numbers = #tpu.dot_dimension_numbers<[1], [0], [0], [1], [0, 0, 1, 1], [], []>} : vector<8x8xf32>, vector<8x128xf32>, vector<8x128xf32> -> vector<8x128xf32>
    %c0_8 = arith.constant 0 : index
    %c0_9 = arith.constant 0 : index
    %6 = vector.load %arg3[%c0_8, %c0_9] : memref<128x256xf32, #tpu.memory_space<vmem>>, vector<128x256xf32>
    %cst_10 = arith.constant dense<0.000000e+00> : vector<8x256xf32>
    %7 = tpu.matmul %5, %6, %cst_10 {dimension_numbers = #tpu.dot_dimension_numbers<[1], [0], [0], [1], [0, 0, 1, 1], [], []>} : vector<8x128xf32>, vector<128x256xf32>, vector<8x256xf32> -> vector<8x256xf32>
    %8 = arith.addf %2, %7 : vector<8x256xf32>
    %c0_11 = arith.constant 0 : index
    %c0_12 = arith.constant 0 : index
    %9 = vector.load %arg9[%c0_11, %c0_12] : memref<8x1xf32, #tpu.memory_space<vmem>>, vector<8x1xf32>
    %c0_13 = arith.constant 0 : index
    %c0_14 = arith.constant 0 : index
    %10 = vector.load %arg4[%c0_13, %c0_14] : memref<1x256xf32, #tpu.memory_space<vmem>>, vector<1x256xf32>
    %11 = vector.broadcast %9 : vector<8x1xf32> to vector<8x256xf32>
    %12 = vector.broadcast %10 : vector<1x256xf32> to vector<8x256xf32>
    %13 = arith.mulf %11, %12 : vector<8x256xf32>
    %14 = arith.addf %8, %13 : vector<8x256xf32>
    %c0_15 = arith.constant 0 : index
    %c0_16 = arith.constant 0 : index
    %15 = vector.load %arg10[%c0_15, %c0_16] : memref<8x1xf32, #tpu.memory_space<vmem>>, vector<8x1xf32>
    %c0_17 = arith.constant 0 : index
    %c0_18 = arith.constant 0 : index
    %16 = vector.load %arg5[%c0_17, %c0_18] : memref<1x256xf32, #tpu.memory_space<vmem>>, vector<1x256xf32>
    %17 = vector.broadcast %15 : vector<8x1xf32> to vector<8x256xf32>
    %18 = vector.broadcast %16 : vector<1x256xf32> to vector<8x256xf32>
    %19 = arith.mulf %17, %18 : vector<8x256xf32>
    %20 = arith.addf %14, %19 : vector<8x256xf32>
    %c0_19 = arith.constant 0 : index
    %c0_20 = arith.constant 0 : index
    %21 = vector.load %arg11[%c0_19, %c0_20] : memref<8x1xf32, #tpu.memory_space<vmem>>, vector<8x1xf32>
    %22 = vector.broadcast %21 : vector<8x1xf32> to vector<8x256xf32>
    %23 = arith.addf %20, %22 : vector<8x256xf32>
    %c0_21 = arith.constant 0 : index
    %c0_22 = arith.constant 0 : index
    %24 = vector.load %arg6[%c0_21, %c0_22] : memref<8x256xf32, #tpu.memory_space<vmem>>, vector<8x256xf32>
    %25 = math.tanh %23 : vector<8x256xf32>
    %26 = arith.addf %24, %25 : vector<8x256xf32>
    %c0_23 = arith.constant 0 : index
    %c0_24 = arith.constant 0 : index
    %27 = vector.load %arg12[%c0_23, %c0_24] : memref<8x256xf32, #tpu.memory_space<vmem>>, vector<8x256xf32>
    tpu.vector_store %arg12[%c0_23, %c0_24], %26 {strides = array<i32>} : memref<8x256xf32, #tpu.memory_space<vmem>>, vector<8x256xf32>,
    return
  }
  func.func @transform_0(%arg0: i32) -> (i32, i32) {
    %c0_i32 = arith.constant 0 : i32
    %c0_i32_0 = arith.constant 0 : i32
    return %c0_i32, %arg0 : i32, i32
  }
  func.func @transform_1(%arg0: i32) -> (i32, i32) {
    %c0_i32 = arith.constant 0 : i32
    %c0_i32_0 = arith.constant 0 : i32
    %c0_i32_1 = arith.constant 0 : i32
    return %c0_i32, %c0_i32_0 : i32, i32
  }
  func.func @transform_2(%arg0: i32) -> (i32, i32) {
    %c0_i32 = arith.constant 0 : i32
    %c0_i32_0 = arith.constant 0 : i32
    return %c0_i32, %arg0 : i32, i32
  }
  func.func @transform_3(%arg0: i32) -> (i32, i32) {
    %c0_i32 = arith.constant 0 : i32
    %c0_i32_0 = arith.constant 0 : i32
    return %c0_i32, %arg0 : i32, i32
  }
  func.func @transform_4(%arg0: i32) -> (i32, i32) {
    %c0_i32 = arith.constant 0 : i32
    %c0_i32_0 = arith.constant 0 : i32
    return %c0_i32, %arg0 : i32, i32
  }
  func.func @transform_5(%arg0: i32) -> (i32, i32) {
    %c0_i32 = arith.constant 0 : i32
    %c0_i32_0 = arith.constant 0 : i32
    return %c0_i32, %arg0 : i32, i32
  }
  func.func @transform_6(%arg0: i32) -> (i32, i32) {
    %c0_i32 = arith.constant 0 : i32
    %c0_i32_0 = arith.constant 0 : i32
    %c0_i32_1 = arith.constant 0 : i32
    return %c0_i32, %c0_i32_0 : i32, i32
  }
  func.func @transform_7(%arg0: i32) -> (i32, i32) {
    %c0_i32 = arith.constant 0 : i32
    %c0_i32_0 = arith.constant 0 : i32
    %c0_i32_1 = arith.constant 0 : i32
    return %c0_i32, %c0_i32_0 : i32, i32
  }
  func.func @transform_8(%arg0: i32) -> (i32, i32) {
    %c0_i32 = arith.constant 0 : i32
    %c0_i32_0 = arith.constant 0 : i32
    %c0_i32_1 = arith.constant 0 : i32
    return %c0_i32, %c0_i32_0 : i32, i32
  }
  func.func @transform_9(%arg0: i32) -> (i32, i32) {
    %c0_i32 = arith.constant 0 : i32
    %c0_i32_0 = arith.constant 0 : i32
    %c0_i32_1 = arith.constant 0 : i32
    return %c0_i32, %c0_i32_0 : i32, i32
  }
  func.func @transform_10(%arg0: i32) -> (i32, i32) {
    %c0_i32 = arith.constant 0 : i32
    %c0_i32_0 = arith.constant 0 : i32
    %c0_i32_1 = arith.constant 0 : i32
    return %c0_i32, %c0_i32_0 : i32, i32
  }
  func.func @transform_11(%arg0: i32) -> (i32, i32) {
    %c0_i32 = arith.constant 0 : i32
    %c0_i32_0 = arith.constant 0 : i32
    return %c0_i32, %arg0 : i32, i32
  }
}

module attributes {stable_mosaic.version = 11 : i64} {
  func.func @_mm_kernel(%arg0: i32, %arg1: memref<8x72xf32, #tpu.memory_space<vmem>>, %arg2: memref<72x256xf32, #tpu.memory_space<vmem>>, %arg3: memref<8x1xf32, #tpu.memory_space<vmem>>, %arg4: memref<8x256xf32, #tpu.memory_space<vmem>>) attributes {dimension_semantics = [#tpu.dimension_semantics<parallel>], iteration_bounds = array<i64: 2>, scalar_prefetch = 0 : i64, scratch_operands = 0 : i64, tpu.core_type = #tpu.core_type<tc>, window_params = [{pipeline_mode = #tpu.pipeline_mode<synchronous>, transform_indices = @transform_0, window_bounds = array<i64: 8, 72>}, {transform_indices = @transform_1, window_bounds = array<i64: 72, 256>}, {pipeline_mode = #tpu.pipeline_mode<synchronous>, transform_indices = @transform_2, window_bounds = array<i64: 8, 1>}, {transform_indices = @transform_3, window_bounds = array<i64: 8, 256>}]} {
    %c0 = arith.constant 0 : index
    %c0_0 = arith.constant 0 : index
    %0 = vector.load %arg1[%c0, %c0_0] : memref<8x72xf32, #tpu.memory_space<vmem>>, vector<8x72xf32>
    %c0_1 = arith.constant 0 : index
    %c0_2 = arith.constant 0 : index
    %1 = vector.load %arg2[%c0_1, %c0_2] : memref<72x256xf32, #tpu.memory_space<vmem>>, vector<72x256xf32>
    %cst = arith.constant dense<0.000000e+00> : vector<8x256xf32>
    %2 = tpu.matmul %0, %1, %cst {dimension_numbers = #tpu.dot_dimension_numbers<[1], [0], [0], [1], [0, 0, 1, 1], [], []>} : vector<8x72xf32>, vector<72x256xf32>, vector<8x256xf32> -> vector<8x256xf32>
    %c0_3 = arith.constant 0 : index
    %c0_4 = arith.constant 0 : index
    %3 = vector.load %arg3[%c0_3, %c0_4] : memref<8x1xf32, #tpu.memory_space<vmem>>, vector<8x1xf32>
    %4 = vector.broadcast %3 : vector<8x1xf32> to vector<8x256xf32>
    %5 = arith.addf %2, %4 : vector<8x256xf32>
    %cst_5 = arith.constant 0.000000e+00 : f32
    %6 = vector.broadcast %cst_5 : f32 to vector<8x256xf32>
    %7 = arith.cmpf oge, %5, %6 : vector<8x256xf32>
    %cst_6 = arith.constant 0.00999999977 : f32
    %8 = vector.broadcast %cst_6 : f32 to vector<8x256xf32>
    %9 = arith.mulf %8, %5 : vector<8x256xf32>
    %10 = arith.select %7, %5, %9 : vector<8x256xi1>, vector<8x256xf32>
    %c0_7 = arith.constant 0 : index
    %c0_8 = arith.constant 0 : index
    %11 = vector.load %arg4[%c0_7, %c0_8] : memref<8x256xf32, #tpu.memory_space<vmem>>, vector<8x256xf32>
    tpu.vector_store %arg4[%c0_7, %c0_8], %10 {strides = array<i32>} : memref<8x256xf32, #tpu.memory_space<vmem>>, vector<8x256xf32>,
    return
  }
  func.func @transform_0(%arg0: i32) -> (i32, i32) {
    %c0_i32 = arith.constant 0 : i32
    %c0_i32_0 = arith.constant 0 : i32
    %c0_i32_1 = arith.constant 0 : i32
    return %c0_i32, %c0_i32_0 : i32, i32
  }
  func.func @transform_1(%arg0: i32) -> (i32, i32) {
    %c0_i32 = arith.constant 0 : i32
    %c0_i32_0 = arith.constant 0 : i32
    return %c0_i32, %arg0 : i32, i32
  }
  func.func @transform_2(%arg0: i32) -> (i32, i32) {
    %c0_i32 = arith.constant 0 : i32
    %c0_i32_0 = arith.constant 0 : i32
    %c0_i32_1 = arith.constant 0 : i32
    return %c0_i32, %c0_i32_0 : i32, i32
  }
  func.func @transform_3(%arg0: i32) -> (i32, i32) {
    %c0_i32 = arith.constant 0 : i32
    %c0_i32_0 = arith.constant 0 : i32
    return %c0_i32, %arg0 : i32, i32
  }
}

module attributes {stable_mosaic.version = 11 : i64} {
  func.func @_update_td_kernel(%arg0: i32, %arg1: memref<8x128xf32, #tpu.memory_space<vmem>>, %arg2: memref<8x32xf32, #tpu.memory_space<vmem>>, %arg3: memref<32x128xf32, #tpu.memory_space<vmem>>, %arg4: memref<1x128xf32, #tpu.memory_space<vmem>>, %arg5: memref<1x128xf32, #tpu.memory_space<vmem>>, %arg6: memref<8x128xf32, #tpu.memory_space<vmem>>, %arg7: memref<8x8xf32, #tpu.memory_space<vmem>>, %arg8: memref<8x8xf32, #tpu.memory_space<vmem>>, %arg9: memref<8x1xf32, #tpu.memory_space<vmem>>, %arg10: memref<8x1xf32, #tpu.memory_space<vmem>>, %arg11: memref<8x1xf32, #tpu.memory_space<vmem>>, %arg12: memref<8x128xf32, #tpu.memory_space<vmem>>) attributes {dimension_semantics = [#tpu.dimension_semantics<parallel>], iteration_bounds = array<i64: 1>, scalar_prefetch = 0 : i64, scratch_operands = 0 : i64, tpu.core_type = #tpu.core_type<tc>, window_params = [{transform_indices = @transform_0, window_bounds = array<i64: 8, 128>}, {pipeline_mode = #tpu.pipeline_mode<synchronous>, transform_indices = @transform_1, window_bounds = array<i64: 8, 32>}, {transform_indices = @transform_2, window_bounds = array<i64: 32, 128>}, {transform_indices = @transform_3, window_bounds = array<i64: 1, 128>}, {transform_indices = @transform_4, window_bounds = array<i64: 1, 128>}, {transform_indices = @transform_5, window_bounds = array<i64: 8, 128>}, {pipeline_mode = #tpu.pipeline_mode<synchronous>, transform_indices = @transform_6, window_bounds = array<i64: 8, 8>}, {pipeline_mode = #tpu.pipeline_mode<synchronous>, transform_indices = @transform_7, window_bounds = array<i64: 8, 8>}, {pipeline_mode = #tpu.pipeline_mode<synchronous>, transform_indices = @transform_8, window_bounds = array<i64: 8, 1>}, {pipeline_mode = #tpu.pipeline_mode<synchronous>, transform_indices = @transform_9, window_bounds = array<i64: 8, 1>}, {pipeline_mode = #tpu.pipeline_mode<synchronous>, transform_indices = @transform_10, window_bounds = array<i64: 8, 1>}, {transform_indices = @transform_11, window_bounds = array<i64: 8, 128>}]} {
    %c0 = arith.constant 0 : index
    %c0_0 = arith.constant 0 : index
    %0 = vector.load %arg7[%c0, %c0_0] : memref<8x8xf32, #tpu.memory_space<vmem>>, vector<8x8xf32>
    %c0_1 = arith.constant 0 : index
    %c0_2 = arith.constant 0 : index
    %1 = vector.load %arg1[%c0_1, %c0_2] : memref<8x128xf32, #tpu.memory_space<vmem>>, vector<8x128xf32>
    %cst = arith.constant dense<0.000000e+00> : vector<8x128xf32>
    %2 = tpu.matmul %0, %1, %cst {dimension_numbers = #tpu.dot_dimension_numbers<[1], [0], [0], [1], [0, 0, 1, 1], [], []>} : vector<8x8xf32>, vector<8x128xf32>, vector<8x128xf32> -> vector<8x128xf32>
    %c0_3 = arith.constant 0 : index
    %c0_4 = arith.constant 0 : index
    %3 = vector.load %arg8[%c0_3, %c0_4] : memref<8x8xf32, #tpu.memory_space<vmem>>, vector<8x8xf32>
    %c0_5 = arith.constant 0 : index
    %c0_6 = arith.constant 0 : index
    %4 = vector.load %arg2[%c0_5, %c0_6] : memref<8x32xf32, #tpu.memory_space<vmem>>, vector<8x32xf32>
    %cst_7 = arith.constant dense<0.000000e+00> : vector<8x32xf32>
    %5 = tpu.matmul %3, %4, %cst_7 {dimension_numbers = #tpu.dot_dimension_numbers<[1], [0], [0], [1], [0, 0, 1, 1], [], []>} : vector<8x8xf32>, vector<8x32xf32>, vector<8x32xf32> -> vector<8x32xf32>
    %c0_8 = arith.constant 0 : index
    %c0_9 = arith.constant 0 : index
    %6 = vector.load %arg3[%c0_8, %c0_9] : memref<32x128xf32, #tpu.memory_space<vmem>>, vector<32x128xf32>
    %cst_10 = arith.constant dense<0.000000e+00> : vector<8x128xf32>
    %7 = tpu.matmul %5, %6, %cst_10 {dimension_numbers = #tpu.dot_dimension_numbers<[1], [0], [0], [1], [0, 0, 1, 1], [], []>} : vector<8x32xf32>, vector<32x128xf32>, vector<8x128xf32> -> vector<8x128xf32>
    %8 = arith.addf %2, %7 : vector<8x128xf32>
    %c0_11 = arith.constant 0 : index
    %c0_12 = arith.constant 0 : index
    %9 = vector.load %arg9[%c0_11, %c0_12] : memref<8x1xf32, #tpu.memory_space<vmem>>, vector<8x1xf32>
    %c0_13 = arith.constant 0 : index
    %c0_14 = arith.constant 0 : index
    %10 = vector.load %arg4[%c0_13, %c0_14] : memref<1x128xf32, #tpu.memory_space<vmem>>, vector<1x128xf32>
    %11 = vector.broadcast %9 : vector<8x1xf32> to vector<8x128xf32>
    %12 = vector.broadcast %10 : vector<1x128xf32> to vector<8x128xf32>
    %13 = arith.mulf %11, %12 : vector<8x128xf32>
    %14 = arith.addf %8, %13 : vector<8x128xf32>
    %c0_15 = arith.constant 0 : index
    %c0_16 = arith.constant 0 : index
    %15 = vector.load %arg10[%c0_15, %c0_16] : memref<8x1xf32, #tpu.memory_space<vmem>>, vector<8x1xf32>
    %c0_17 = arith.constant 0 : index
    %c0_18 = arith.constant 0 : index
    %16 = vector.load %arg5[%c0_17, %c0_18] : memref<1x128xf32, #tpu.memory_space<vmem>>, vector<1x128xf32>
    %17 = vector.broadcast %15 : vector<8x1xf32> to vector<8x128xf32>
    %18 = vector.broadcast %16 : vector<1x128xf32> to vector<8x128xf32>
    %19 = arith.mulf %17, %18 : vector<8x128xf32>
    %20 = arith.addf %14, %19 : vector<8x128xf32>
    %c0_19 = arith.constant 0 : index
    %c0_20 = arith.constant 0 : index
    %21 = vector.load %arg11[%c0_19, %c0_20] : memref<8x1xf32, #tpu.memory_space<vmem>>, vector<8x1xf32>
    %22 = vector.broadcast %21 : vector<8x1xf32> to vector<8x128xf32>
    %23 = arith.addf %20, %22 : vector<8x128xf32>
    %c0_21 = arith.constant 0 : index
    %c0_22 = arith.constant 0 : index
    %24 = vector.load %arg6[%c0_21, %c0_22] : memref<8x128xf32, #tpu.memory_space<vmem>>, vector<8x128xf32>
    %25 = math.tanh %23 : vector<8x128xf32>
    %26 = arith.addf %24, %25 : vector<8x128xf32>
    %c0_23 = arith.constant 0 : index
    %c0_24 = arith.constant 0 : index
    %27 = vector.load %arg12[%c0_23, %c0_24] : memref<8x128xf32, #tpu.memory_space<vmem>>, vector<8x128xf32>
    tpu.vector_store %arg12[%c0_23, %c0_24], %26 {strides = array<i32>} : memref<8x128xf32, #tpu.memory_space<vmem>>, vector<8x128xf32>,
    return
  }
  func.func @transform_0(%arg0: i32) -> (i32, i32) {
    %c0_i32 = arith.constant 0 : i32
    %c0_i32_0 = arith.constant 0 : i32
    return %c0_i32, %arg0 : i32, i32
  }
  func.func @transform_1(%arg0: i32) -> (i32, i32) {
    %c0_i32 = arith.constant 0 : i32
    %c0_i32_0 = arith.constant 0 : i32
    %c0_i32_1 = arith.constant 0 : i32
    return %c0_i32, %c0_i32_0 : i32, i32
  }
  func.func @transform_2(%arg0: i32) -> (i32, i32) {
    %c0_i32 = arith.constant 0 : i32
    %c0_i32_0 = arith.constant 0 : i32
    return %c0_i32, %arg0 : i32, i32
  }
  func.func @transform_3(%arg0: i32) -> (i32, i32) {
    %c0_i32 = arith.constant 0 : i32
    %c0_i32_0 = arith.constant 0 : i32
    return %c0_i32, %arg0 : i32, i32
  }
  func.func @transform_4(%arg0: i32) -> (i32, i32) {
    %c0_i32 = arith.constant 0 : i32
    %c0_i32_0 = arith.constant 0 : i32
    return %c0_i32, %arg0 : i32, i32
  }
  func.func @transform_5(%arg0: i32) -> (i32, i32) {
    %c0_i32 = arith.constant 0 : i32
    %c0_i32_0 = arith.constant 0 : i32
    return %c0_i32, %arg0 : i32, i32
  }
  func.func @transform_6(%arg0: i32) -> (i32, i32) {
    %c0_i32 = arith.constant 0 : i32
    %c0_i32_0 = arith.constant 0 : i32
    %c0_i32_1 = arith.constant 0 : i32
    return %c0_i32, %c0_i32_0 : i32, i32
  }
  func.func @transform_7(%arg0: i32) -> (i32, i32) {
    %c0_i32 = arith.constant 0 : i32
    %c0_i32_0 = arith.constant 0 : i32
    %c0_i32_1 = arith.constant 0 : i32
    return %c0_i32, %c0_i32_0 : i32, i32
  }
  func.func @transform_8(%arg0: i32) -> (i32, i32) {
    %c0_i32 = arith.constant 0 : i32
    %c0_i32_0 = arith.constant 0 : i32
    %c0_i32_1 = arith.constant 0 : i32
    return %c0_i32, %c0_i32_0 : i32, i32
  }
  func.func @transform_9(%arg0: i32) -> (i32, i32) {
    %c0_i32 = arith.constant 0 : i32
    %c0_i32_0 = arith.constant 0 : i32
    %c0_i32_1 = arith.constant 0 : i32
    return %c0_i32, %c0_i32_0 : i32, i32
  }
  func.func @transform_10(%arg0: i32) -> (i32, i32) {
    %c0_i32 = arith.constant 0 : i32
    %c0_i32_0 = arith.constant 0 : i32
    %c0_i32_1 = arith.constant 0 : i32
    return %c0_i32, %c0_i32_0 : i32, i32
  }
  func.func @transform_11(%arg0: i32) -> (i32, i32) {
    %c0_i32 = arith.constant 0 : i32
    %c0_i32_0 = arith.constant 0 : i32
    return %c0_i32, %arg0 : i32, i32
  }
}

module attributes {stable_mosaic.version = 11 : i64} {
  func.func @_mm_kernel(%arg0: i32, %arg1: memref<8x72xf32, #tpu.memory_space<vmem>>, %arg2: memref<72x128xf32, #tpu.memory_space<vmem>>, %arg3: memref<8x1xf32, #tpu.memory_space<vmem>>, %arg4: memref<8x128xf32, #tpu.memory_space<vmem>>) attributes {dimension_semantics = [#tpu.dimension_semantics<parallel>], iteration_bounds = array<i64: 1>, scalar_prefetch = 0 : i64, scratch_operands = 0 : i64, tpu.core_type = #tpu.core_type<tc>, window_params = [{pipeline_mode = #tpu.pipeline_mode<synchronous>, transform_indices = @transform_0, window_bounds = array<i64: 8, 72>}, {transform_indices = @transform_1, window_bounds = array<i64: 72, 128>}, {pipeline_mode = #tpu.pipeline_mode<synchronous>, transform_indices = @transform_2, window_bounds = array<i64: 8, 1>}, {transform_indices = @transform_3, window_bounds = array<i64: 8, 128>}]} {
    %c0 = arith.constant 0 : index
    %c0_0 = arith.constant 0 : index
    %0 = vector.load %arg1[%c0, %c0_0] : memref<8x72xf32, #tpu.memory_space<vmem>>, vector<8x72xf32>
    %c0_1 = arith.constant 0 : index
    %c0_2 = arith.constant 0 : index
    %1 = vector.load %arg2[%c0_1, %c0_2] : memref<72x128xf32, #tpu.memory_space<vmem>>, vector<72x128xf32>
    %cst = arith.constant dense<0.000000e+00> : vector<8x128xf32>
    %2 = tpu.matmul %0, %1, %cst {dimension_numbers = #tpu.dot_dimension_numbers<[1], [0], [0], [1], [0, 0, 1, 1], [], []>} : vector<8x72xf32>, vector<72x128xf32>, vector<8x128xf32> -> vector<8x128xf32>
    %c0_3 = arith.constant 0 : index
    %c0_4 = arith.constant 0 : index
    %3 = vector.load %arg3[%c0_3, %c0_4] : memref<8x1xf32, #tpu.memory_space<vmem>>, vector<8x1xf32>
    %4 = vector.broadcast %3 : vector<8x1xf32> to vector<8x128xf32>
    %5 = arith.addf %2, %4 : vector<8x128xf32>
    %cst_5 = arith.constant 0.000000e+00 : f32
    %6 = vector.broadcast %cst_5 : f32 to vector<8x128xf32>
    %7 = arith.cmpf oge, %5, %6 : vector<8x128xf32>
    %cst_6 = arith.constant 0.00999999977 : f32
    %8 = vector.broadcast %cst_6 : f32 to vector<8x128xf32>
    %9 = arith.mulf %8, %5 : vector<8x128xf32>
    %10 = arith.select %7, %5, %9 : vector<8x128xi1>, vector<8x128xf32>
    %c0_7 = arith.constant 0 : index
    %c0_8 = arith.constant 0 : index
    %11 = vector.load %arg4[%c0_7, %c0_8] : memref<8x128xf32, #tpu.memory_space<vmem>>, vector<8x128xf32>
    tpu.vector_store %arg4[%c0_7, %c0_8], %10 {strides = array<i32>} : memref<8x128xf32, #tpu.memory_space<vmem>>, vector<8x128xf32>,
    return
  }
  func.func @transform_0(%arg0: i32) -> (i32, i32) {
    %c0_i32 = arith.constant 0 : i32
    %c0_i32_0 = arith.constant 0 : i32
    %c0_i32_1 = arith.constant 0 : i32
    return %c0_i32, %c0_i32_0 : i32, i32
  }
  func.func @transform_1(%arg0: i32) -> (i32, i32) {
    %c0_i32 = arith.constant 0 : i32
    %c0_i32_0 = arith.constant 0 : i32
    return %c0_i32, %arg0 : i32, i32
  }
  func.func @transform_2(%arg0: i32) -> (i32, i32) {
    %c0_i32 = arith.constant 0 : i32
    %c0_i32_0 = arith.constant 0 : i32
    %c0_i32_1 = arith.constant 0 : i32
    return %c0_i32, %c0_i32_0 : i32, i32
  }
  func.func @transform_3(%arg0: i32) -> (i32, i32) {
    %c0_i32 = arith.constant 0 : i32
    %c0_i32_0 = arith.constant 0 : i32
    return %c0_i32, %arg0 : i32, i32
  }
}

module attributes {stable_mosaic.version = 11 : i64} {
  func.func @_update_td_kernel(%arg0: i32, %arg1: memref<8x32xf32, #tpu.memory_space<vmem>>, %arg2: memref<8x2xf32, #tpu.memory_space<vmem>>, %arg3: memref<2x32xf32, #tpu.memory_space<vmem>>, %arg4: memref<1x32xf32, #tpu.memory_space<vmem>>, %arg5: memref<1x32xf32, #tpu.memory_space<vmem>>, %arg6: memref<8x32xf32, #tpu.memory_space<vmem>>, %arg7: memref<8x8xf32, #tpu.memory_space<vmem>>, %arg8: memref<8x8xf32, #tpu.memory_space<vmem>>, %arg9: memref<8x1xf32, #tpu.memory_space<vmem>>, %arg10: memref<8x1xf32, #tpu.memory_space<vmem>>, %arg11: memref<8x1xf32, #tpu.memory_space<vmem>>, %arg12: memref<8x32xf32, #tpu.memory_space<vmem>>) attributes {dimension_semantics = [#tpu.dimension_semantics<parallel>], iteration_bounds = array<i64: 1>, scalar_prefetch = 0 : i64, scratch_operands = 0 : i64, tpu.core_type = #tpu.core_type<tc>, window_params = [{transform_indices = @transform_0, window_bounds = array<i64: 8, 32>}, {pipeline_mode = #tpu.pipeline_mode<synchronous>, transform_indices = @transform_1, window_bounds = array<i64: 8, 2>}, {transform_indices = @transform_2, window_bounds = array<i64: 2, 32>}, {transform_indices = @transform_3, window_bounds = array<i64: 1, 32>}, {transform_indices = @transform_4, window_bounds = array<i64: 1, 32>}, {transform_indices = @transform_5, window_bounds = array<i64: 8, 32>}, {pipeline_mode = #tpu.pipeline_mode<synchronous>, transform_indices = @transform_6, window_bounds = array<i64: 8, 8>}, {pipeline_mode = #tpu.pipeline_mode<synchronous>, transform_indices = @transform_7, window_bounds = array<i64: 8, 8>}, {pipeline_mode = #tpu.pipeline_mode<synchronous>, transform_indices = @transform_8, window_bounds = array<i64: 8, 1>}, {pipeline_mode = #tpu.pipeline_mode<synchronous>, transform_indices = @transform_9, window_bounds = array<i64: 8, 1>}, {pipeline_mode = #tpu.pipeline_mode<synchronous>, transform_indices = @transform_10, window_bounds = array<i64: 8, 1>}, {transform_indices = @transform_11, window_bounds = array<i64: 8, 32>}]} {
    %c0 = arith.constant 0 : index
    %c0_0 = arith.constant 0 : index
    %0 = vector.load %arg7[%c0, %c0_0] : memref<8x8xf32, #tpu.memory_space<vmem>>, vector<8x8xf32>
    %c0_1 = arith.constant 0 : index
    %c0_2 = arith.constant 0 : index
    %1 = vector.load %arg1[%c0_1, %c0_2] : memref<8x32xf32, #tpu.memory_space<vmem>>, vector<8x32xf32>
    %cst = arith.constant dense<0.000000e+00> : vector<8x32xf32>
    %2 = tpu.matmul %0, %1, %cst {dimension_numbers = #tpu.dot_dimension_numbers<[1], [0], [0], [1], [0, 0, 1, 1], [], []>} : vector<8x8xf32>, vector<8x32xf32>, vector<8x32xf32> -> vector<8x32xf32>
    %c0_3 = arith.constant 0 : index
    %c0_4 = arith.constant 0 : index
    %3 = vector.load %arg8[%c0_3, %c0_4] : memref<8x8xf32, #tpu.memory_space<vmem>>, vector<8x8xf32>
    %c0_5 = arith.constant 0 : index
    %c0_6 = arith.constant 0 : index
    %4 = vector.load %arg2[%c0_5, %c0_6] : memref<8x2xf32, #tpu.memory_space<vmem>>, vector<8x2xf32>
    %cst_7 = arith.constant dense<0.000000e+00> : vector<8x2xf32>
    %5 = tpu.matmul %3, %4, %cst_7 {dimension_numbers = #tpu.dot_dimension_numbers<[1], [0], [0], [1], [0, 0, 1, 1], [], []>} : vector<8x8xf32>, vector<8x2xf32>, vector<8x2xf32> -> vector<8x2xf32>
    %c0_8 = arith.constant 0 : index
    %c0_9 = arith.constant 0 : index
    %6 = vector.load %arg3[%c0_8, %c0_9] : memref<2x32xf32, #tpu.memory_space<vmem>>, vector<2x32xf32>
    %cst_10 = arith.constant dense<0.000000e+00> : vector<8x32xf32>
    %7 = tpu.matmul %5, %6, %cst_10 {dimension_numbers = #tpu.dot_dimension_numbers<[1], [0], [0], [1], [0, 0, 1, 1], [], []>} : vector<8x2xf32>, vector<2x32xf32>, vector<8x32xf32> -> vector<8x32xf32>
    %8 = arith.addf %2, %7 : vector<8x32xf32>
    %c0_11 = arith.constant 0 : index
    %c0_12 = arith.constant 0 : index
    %9 = vector.load %arg9[%c0_11, %c0_12] : memref<8x1xf32, #tpu.memory_space<vmem>>, vector<8x1xf32>
    %c0_13 = arith.constant 0 : index
    %c0_14 = arith.constant 0 : index
    %10 = vector.load %arg4[%c0_13, %c0_14] : memref<1x32xf32, #tpu.memory_space<vmem>>, vector<1x32xf32>
    %11 = vector.broadcast %9 : vector<8x1xf32> to vector<8x32xf32>
    %12 = vector.broadcast %10 : vector<1x32xf32> to vector<8x32xf32>
    %13 = arith.mulf %11, %12 : vector<8x32xf32>
    %14 = arith.addf %8, %13 : vector<8x32xf32>
    %c0_15 = arith.constant 0 : index
    %c0_16 = arith.constant 0 : index
    %15 = vector.load %arg10[%c0_15, %c0_16] : memref<8x1xf32, #tpu.memory_space<vmem>>, vector<8x1xf32>
    %c0_17 = arith.constant 0 : index
    %c0_18 = arith.constant 0 : index
    %16 = vector.load %arg5[%c0_17, %c0_18] : memref<1x32xf32, #tpu.memory_space<vmem>>, vector<1x32xf32>
    %17 = vector.broadcast %15 : vector<8x1xf32> to vector<8x32xf32>
    %18 = vector.broadcast %16 : vector<1x32xf32> to vector<8x32xf32>
    %19 = arith.mulf %17, %18 : vector<8x32xf32>
    %20 = arith.addf %14, %19 : vector<8x32xf32>
    %c0_19 = arith.constant 0 : index
    %c0_20 = arith.constant 0 : index
    %21 = vector.load %arg11[%c0_19, %c0_20] : memref<8x1xf32, #tpu.memory_space<vmem>>, vector<8x1xf32>
    %22 = vector.broadcast %21 : vector<8x1xf32> to vector<8x32xf32>
    %23 = arith.addf %20, %22 : vector<8x32xf32>
    %c0_21 = arith.constant 0 : index
    %c0_22 = arith.constant 0 : index
    %24 = vector.load %arg6[%c0_21, %c0_22] : memref<8x32xf32, #tpu.memory_space<vmem>>, vector<8x32xf32>
    %25 = math.tanh %23 : vector<8x32xf32>
    %26 = arith.addf %24, %25 : vector<8x32xf32>
    %c0_23 = arith.constant 0 : index
    %c0_24 = arith.constant 0 : index
    %27 = vector.load %arg12[%c0_23, %c0_24] : memref<8x32xf32, #tpu.memory_space<vmem>>, vector<8x32xf32>
    tpu.vector_store %arg12[%c0_23, %c0_24], %26 {strides = array<i32>} : memref<8x32xf32, #tpu.memory_space<vmem>>, vector<8x32xf32>,
    return
  }
  func.func @transform_0(%arg0: i32) -> (i32, i32) {
    %c0_i32 = arith.constant 0 : i32
    %c0_i32_0 = arith.constant 0 : i32
    return %c0_i32, %arg0 : i32, i32
  }
  func.func @transform_1(%arg0: i32) -> (i32, i32) {
    %c0_i32 = arith.constant 0 : i32
    %c0_i32_0 = arith.constant 0 : i32
    %c0_i32_1 = arith.constant 0 : i32
    return %c0_i32, %c0_i32_0 : i32, i32
  }
  func.func @transform_2(%arg0: i32) -> (i32, i32) {
    %c0_i32 = arith.constant 0 : i32
    %c0_i32_0 = arith.constant 0 : i32
    return %c0_i32, %arg0 : i32, i32
  }
  func.func @transform_3(%arg0: i32) -> (i32, i32) {
    %c0_i32 = arith.constant 0 : i32
    %c0_i32_0 = arith.constant 0 : i32
    return %c0_i32, %arg0 : i32, i32
  }
  func.func @transform_4(%arg0: i32) -> (i32, i32) {
    %c0_i32 = arith.constant 0 : i32
    %c0_i32_0 = arith.constant 0 : i32
    return %c0_i32, %arg0 : i32, i32
  }
  func.func @transform_5(%arg0: i32) -> (i32, i32) {
    %c0_i32 = arith.constant 0 : i32
    %c0_i32_0 = arith.constant 0 : i32
    return %c0_i32, %arg0 : i32, i32
  }
  func.func @transform_6(%arg0: i32) -> (i32, i32) {
    %c0_i32 = arith.constant 0 : i32
    %c0_i32_0 = arith.constant 0 : i32
    %c0_i32_1 = arith.constant 0 : i32
    return %c0_i32, %c0_i32_0 : i32, i32
  }
  func.func @transform_7(%arg0: i32) -> (i32, i32) {
    %c0_i32 = arith.constant 0 : i32
    %c0_i32_0 = arith.constant 0 : i32
    %c0_i32_1 = arith.constant 0 : i32
    return %c0_i32, %c0_i32_0 : i32, i32
  }
  func.func @transform_8(%arg0: i32) -> (i32, i32) {
    %c0_i32 = arith.constant 0 : i32
    %c0_i32_0 = arith.constant 0 : i32
    %c0_i32_1 = arith.constant 0 : i32
    return %c0_i32, %c0_i32_0 : i32, i32
  }
  func.func @transform_9(%arg0: i32) -> (i32, i32) {
    %c0_i32 = arith.constant 0 : i32
    %c0_i32_0 = arith.constant 0 : i32
    %c0_i32_1 = arith.constant 0 : i32
    return %c0_i32, %c0_i32_0 : i32, i32
  }
  func.func @transform_10(%arg0: i32) -> (i32, i32) {
    %c0_i32 = arith.constant 0 : i32
    %c0_i32_0 = arith.constant 0 : i32
    %c0_i32_1 = arith.constant 0 : i32
    return %c0_i32, %c0_i32_0 : i32, i32
  }
  func.func @transform_11(%arg0: i32) -> (i32, i32) {
    %c0_i32 = arith.constant 0 : i32
    %c0_i32_0 = arith.constant 0 : i32
    return %c0_i32, %arg0 : i32, i32
  }
}

module attributes {stable_mosaic.version = 11 : i64} {
  func.func @_mm_kernel(%arg0: i32, %arg1: memref<8x72xf32, #tpu.memory_space<vmem>>, %arg2: memref<72x8xf32, #tpu.memory_space<vmem>>, %arg3: memref<8x1xf32, #tpu.memory_space<vmem>>, %arg4: memref<8x8xf32, #tpu.memory_space<vmem>>) attributes {dimension_semantics = [#tpu.dimension_semantics<parallel>], iteration_bounds = array<i64: 1>, scalar_prefetch = 0 : i64, scratch_operands = 0 : i64, tpu.core_type = #tpu.core_type<tc>, window_params = [{pipeline_mode = #tpu.pipeline_mode<synchronous>, transform_indices = @transform_0, window_bounds = array<i64: 8, 72>}, {transform_indices = @transform_1, window_bounds = array<i64: 72, 8>}, {pipeline_mode = #tpu.pipeline_mode<synchronous>, transform_indices = @transform_2, window_bounds = array<i64: 8, 1>}, {transform_indices = @transform_3, window_bounds = array<i64: 8, 8>}]} {
    %c0 = arith.constant 0 : index
    %c0_0 = arith.constant 0 : index
    %0 = vector.load %arg1[%c0, %c0_0] : memref<8x72xf32, #tpu.memory_space<vmem>>, vector<8x72xf32>
    %c0_1 = arith.constant 0 : index
    %c0_2 = arith.constant 0 : index
    %1 = vector.load %arg2[%c0_1, %c0_2] : memref<72x8xf32, #tpu.memory_space<vmem>>, vector<72x8xf32>
    %cst = arith.constant dense<0.000000e+00> : vector<8x8xf32>
    %2 = tpu.matmul %0, %1, %cst {dimension_numbers = #tpu.dot_dimension_numbers<[1], [0], [0], [1], [0, 0, 1, 1], [], []>} : vector<8x72xf32>, vector<72x8xf32>, vector<8x8xf32> -> vector<8x8xf32>
    %c0_3 = arith.constant 0 : index
    %c0_4 = arith.constant 0 : index
    %3 = vector.load %arg3[%c0_3, %c0_4] : memref<8x1xf32, #tpu.memory_space<vmem>>, vector<8x1xf32>
    %4 = vector.broadcast %3 : vector<8x1xf32> to vector<8x8xf32>
    %5 = arith.addf %2, %4 : vector<8x8xf32>
    %cst_5 = arith.constant 0.000000e+00 : f32
    %6 = vector.broadcast %cst_5 : f32 to vector<8x8xf32>
    %7 = arith.cmpf oge, %5, %6 : vector<8x8xf32>
    %cst_6 = arith.constant 0.00999999977 : f32
    %8 = vector.broadcast %cst_6 : f32 to vector<8x8xf32>
    %9 = arith.mulf %8, %5 : vector<8x8xf32>
    %10 = arith.select %7, %5, %9 : vector<8x8xi1>, vector<8x8xf32>
    %c0_7 = arith.constant 0 : index
    %c0_8 = arith.constant 0 : index
    %11 = vector.load %arg4[%c0_7, %c0_8] : memref<8x8xf32, #tpu.memory_space<vmem>>, vector<8x8xf32>
    tpu.vector_store %arg4[%c0_7, %c0_8], %10 {strides = array<i32>} : memref<8x8xf32, #tpu.memory_space<vmem>>, vector<8x8xf32>,
    return
  }
  func.func @transform_0(%arg0: i32) -> (i32, i32) {
    %c0_i32 = arith.constant 0 : i32
    %c0_i32_0 = arith.constant 0 : i32
    %c0_i32_1 = arith.constant 0 : i32
    return %c0_i32, %c0_i32_0 : i32, i32
  }
  func.func @transform_1(%arg0: i32) -> (i32, i32) {
    %c0_i32 = arith.constant 0 : i32
    %c0_i32_0 = arith.constant 0 : i32
    return %c0_i32, %arg0 : i32, i32
  }
  func.func @transform_2(%arg0: i32) -> (i32, i32) {
    %c0_i32 = arith.constant 0 : i32
    %c0_i32_0 = arith.constant 0 : i32
    %c0_i32_1 = arith.constant 0 : i32
    return %c0_i32, %c0_i32_0 : i32, i32
  }
  func.func @transform_3(%arg0: i32) -> (i32, i32) {
    %c0_i32 = arith.constant 0 : i32
    %c0_i32_0 = arith.constant 0 : i32
    return %c0_i32, %arg0 : i32, i32
  }
}

module attributes {stable_mosaic.version = 11 : i64} {
  func.func @_update_kernel(%arg0: i32, %arg1: memref<8x2xf32, #tpu.memory_space<vmem>>, %arg2: memref<8x2xf32, #tpu.memory_space<vmem>>, %arg3: memref<1x2xf32, #tpu.memory_space<vmem>>, %arg4: memref<1x2xf32, #tpu.memory_space<vmem>>, %arg5: memref<8x2xf32, #tpu.memory_space<vmem>>, %arg6: memref<8x8xf32, #tpu.memory_space<vmem>>, %arg7: memref<8x8xf32, #tpu.memory_space<vmem>>, %arg8: memref<8x1xf32, #tpu.memory_space<vmem>>, %arg9: memref<8x1xf32, #tpu.memory_space<vmem>>, %arg10: memref<8x1xf32, #tpu.memory_space<vmem>>, %arg11: memref<8x2xf32, #tpu.memory_space<vmem>>) attributes {dimension_semantics = [#tpu.dimension_semantics<parallel>], iteration_bounds = array<i64: 1>, scalar_prefetch = 0 : i64, scratch_operands = 0 : i64, tpu.core_type = #tpu.core_type<tc>, window_params = [{transform_indices = @transform_0, window_bounds = array<i64: 8, 2>}, {transform_indices = @transform_1, window_bounds = array<i64: 8, 2>}, {transform_indices = @transform_2, window_bounds = array<i64: 1, 2>}, {transform_indices = @transform_3, window_bounds = array<i64: 1, 2>}, {transform_indices = @transform_4, window_bounds = array<i64: 8, 2>}, {pipeline_mode = #tpu.pipeline_mode<synchronous>, transform_indices = @transform_5, window_bounds = array<i64: 8, 8>}, {pipeline_mode = #tpu.pipeline_mode<synchronous>, transform_indices = @transform_6, window_bounds = array<i64: 8, 8>}, {pipeline_mode = #tpu.pipeline_mode<synchronous>, transform_indices = @transform_7, window_bounds = array<i64: 8, 1>}, {pipeline_mode = #tpu.pipeline_mode<synchronous>, transform_indices = @transform_8, window_bounds = array<i64: 8, 1>}, {pipeline_mode = #tpu.pipeline_mode<synchronous>, transform_indices = @transform_9, window_bounds = array<i64: 8, 1>}, {transform_indices = @transform_10, window_bounds = array<i64: 8, 2>}]} {
    %c0 = arith.constant 0 : index
    %c0_0 = arith.constant 0 : index
    %0 = vector.load %arg6[%c0, %c0_0] : memref<8x8xf32, #tpu.memory_space<vmem>>, vector<8x8xf32>
    %c0_1 = arith.constant 0 : index
    %c0_2 = arith.constant 0 : index
    %1 = vector.load %arg1[%c0_1, %c0_2] : memref<8x2xf32, #tpu.memory_space<vmem>>, vector<8x2xf32>
    %cst = arith.constant dense<0.000000e+00> : vector<8x2xf32>
    %2 = tpu.matmul %0, %1, %cst {dimension_numbers = #tpu.dot_dimension_numbers<[1], [0], [0], [1], [0, 0, 1, 1], [], []>} : vector<8x8xf32>, vector<8x2xf32>, vector<8x2xf32> -> vector<8x2xf32>
    %c0_3 = arith.constant 0 : index
    %c0_4 = arith.constant 0 : index
    %3 = vector.load %arg7[%c0_3, %c0_4] : memref<8x8xf32, #tpu.memory_space<vmem>>, vector<8x8xf32>
    %c0_5 = arith.constant 0 : index
    %c0_6 = arith.constant 0 : index
    %4 = vector.load %arg2[%c0_5, %c0_6] : memref<8x2xf32, #tpu.memory_space<vmem>>, vector<8x2xf32>
    %cst_7 = arith.constant dense<0.000000e+00> : vector<8x2xf32>
    %5 = tpu.matmul %3, %4, %cst_7 {dimension_numbers = #tpu.dot_dimension_numbers<[1], [0], [0], [1], [0, 0, 1, 1], [], []>} : vector<8x8xf32>, vector<8x2xf32>, vector<8x2xf32> -> vector<8x2xf32>
    %6 = arith.addf %2, %5 : vector<8x2xf32>
    %c0_8 = arith.constant 0 : index
    %c0_9 = arith.constant 0 : index
    %7 = vector.load %arg8[%c0_8, %c0_9] : memref<8x1xf32, #tpu.memory_space<vmem>>, vector<8x1xf32>
    %c0_10 = arith.constant 0 : index
    %c0_11 = arith.constant 0 : index
    %8 = vector.load %arg3[%c0_10, %c0_11] : memref<1x2xf32, #tpu.memory_space<vmem>>, vector<1x2xf32>
    %9 = vector.broadcast %7 : vector<8x1xf32> to vector<8x2xf32>
    %10 = vector.broadcast %8 : vector<1x2xf32> to vector<8x2xf32>
    %11 = arith.mulf %9, %10 : vector<8x2xf32>
    %12 = arith.addf %6, %11 : vector<8x2xf32>
    %c0_12 = arith.constant 0 : index
    %c0_13 = arith.constant 0 : index
    %13 = vector.load %arg9[%c0_12, %c0_13] : memref<8x1xf32, #tpu.memory_space<vmem>>, vector<8x1xf32>
    %c0_14 = arith.constant 0 : index
    %c0_15 = arith.constant 0 : index
    %14 = vector.load %arg4[%c0_14, %c0_15] : memref<1x2xf32, #tpu.memory_space<vmem>>, vector<1x2xf32>
    %15 = vector.broadcast %13 : vector<8x1xf32> to vector<8x2xf32>
    %16 = vector.broadcast %14 : vector<1x2xf32> to vector<8x2xf32>
    %17 = arith.mulf %15, %16 : vector<8x2xf32>
    %18 = arith.addf %12, %17 : vector<8x2xf32>
    %c0_16 = arith.constant 0 : index
    %c0_17 = arith.constant 0 : index
    %19 = vector.load %arg10[%c0_16, %c0_17] : memref<8x1xf32, #tpu.memory_space<vmem>>, vector<8x1xf32>
    %20 = vector.broadcast %19 : vector<8x1xf32> to vector<8x2xf32>
    %21 = arith.addf %18, %20 : vector<8x2xf32>
    %c0_18 = arith.constant 0 : index
    %c0_19 = arith.constant 0 : index
    %22 = vector.load %arg5[%c0_18, %c0_19] : memref<8x2xf32, #tpu.memory_space<vmem>>, vector<8x2xf32>
    %23 = math.tanh %21 : vector<8x2xf32>
    %24 = arith.addf %22, %23 : vector<8x2xf32>
    %c0_20 = arith.constant 0 : index
    %c0_21 = arith.constant 0 : index
    %25 = vector.load %arg11[%c0_20, %c0_21] : memref<8x2xf32, #tpu.memory_space<vmem>>, vector<8x2xf32>
    tpu.vector_store %arg11[%c0_20, %c0_21], %24 {strides = array<i32>} : memref<8x2xf32, #tpu.memory_space<vmem>>, vector<8x2xf32>,
    return
  }
  func.func @transform_0(%arg0: i32) -> (i32, i32) {
    %c0_i32 = arith.constant 0 : i32
    %c0_i32_0 = arith.constant 0 : i32
    return %c0_i32, %arg0 : i32, i32
  }
  func.func @transform_1(%arg0: i32) -> (i32, i32) {
    %c0_i32 = arith.constant 0 : i32
    %c0_i32_0 = arith.constant 0 : i32
    return %c0_i32, %arg0 : i32, i32
  }
  func.func @transform_2(%arg0: i32) -> (i32, i32) {
    %c0_i32 = arith.constant 0 : i32
    %c0_i32_0 = arith.constant 0 : i32
    return %c0_i32, %arg0 : i32, i32
  }
  func.func @transform_3(%arg0: i32) -> (i32, i32) {
    %c0_i32 = arith.constant 0 : i32
    %c0_i32_0 = arith.constant 0 : i32
    return %c0_i32, %arg0 : i32, i32
  }
  func.func @transform_4(%arg0: i32) -> (i32, i32) {
    %c0_i32 = arith.constant 0 : i32
    %c0_i32_0 = arith.constant 0 : i32
    return %c0_i32, %arg0 : i32, i32
  }
  func.func @transform_5(%arg0: i32) -> (i32, i32) {
    %c0_i32 = arith.constant 0 : i32
    %c0_i32_0 = arith.constant 0 : i32
    %c0_i32_1 = arith.constant 0 : i32
    return %c0_i32, %c0_i32_0 : i32, i32
  }
  func.func @transform_6(%arg0: i32) -> (i32, i32) {
    %c0_i32 = arith.constant 0 : i32
    %c0_i32_0 = arith.constant 0 : i32
    %c0_i32_1 = arith.constant 0 : i32
    return %c0_i32, %c0_i32_0 : i32, i32
  }
  func.func @transform_7(%arg0: i32) -> (i32, i32) {
    %c0_i32 = arith.constant 0 : i32
    %c0_i32_0 = arith.constant 0 : i32
    %c0_i32_1 = arith.constant 0 : i32
    return %c0_i32, %c0_i32_0 : i32, i32
  }
  func.func @transform_8(%arg0: i32) -> (i32, i32) {
    %c0_i32 = arith.constant 0 : i32
    %c0_i32_0 = arith.constant 0 : i32
    %c0_i32_1 = arith.constant 0 : i32
    return %c0_i32, %c0_i32_0 : i32, i32
  }
  func.func @transform_9(%arg0: i32) -> (i32, i32) {
    %c0_i32 = arith.constant 0 : i32
    %c0_i32_0 = arith.constant 0 : i32
    %c0_i32_1 = arith.constant 0 : i32
    return %c0_i32, %c0_i32_0 : i32, i32
  }
  func.func @transform_10(%arg0: i32) -> (i32, i32) {
    %c0_i32 = arith.constant 0 : i32
    %c0_i32_0 = arith.constant 0 : i32
    return %c0_i32, %arg0 : i32, i32
  }
}

module attributes {stable_mosaic.version = 11 : i64} {
  func.func @_mm_kernel(%arg0: i32, %arg1: memref<3x72xf32, #tpu.memory_space<vmem>>, %arg2: memref<72x256xf32, #tpu.memory_space<vmem>>, %arg3: memref<3x1xf32, #tpu.memory_space<vmem>>, %arg4: memref<3x256xf32, #tpu.memory_space<vmem>>) attributes {dimension_semantics = [#tpu.dimension_semantics<parallel>], iteration_bounds = array<i64: 2>, scalar_prefetch = 0 : i64, scratch_operands = 0 : i64, tpu.core_type = #tpu.core_type<tc>, window_params = [{pipeline_mode = #tpu.pipeline_mode<synchronous>, transform_indices = @transform_0, window_bounds = array<i64: 3, 72>}, {transform_indices = @transform_1, window_bounds = array<i64: 72, 256>}, {pipeline_mode = #tpu.pipeline_mode<synchronous>, transform_indices = @transform_2, window_bounds = array<i64: 3, 1>}, {transform_indices = @transform_3, window_bounds = array<i64: 3, 256>}]} {
    %c0 = arith.constant 0 : index
    %c0_0 = arith.constant 0 : index
    %0 = vector.load %arg1[%c0, %c0_0] : memref<3x72xf32, #tpu.memory_space<vmem>>, vector<3x72xf32>
    %c0_1 = arith.constant 0 : index
    %c0_2 = arith.constant 0 : index
    %1 = vector.load %arg2[%c0_1, %c0_2] : memref<72x256xf32, #tpu.memory_space<vmem>>, vector<72x256xf32>
    %cst = arith.constant dense<0.000000e+00> : vector<3x256xf32>
    %2 = tpu.matmul %0, %1, %cst {dimension_numbers = #tpu.dot_dimension_numbers<[1], [0], [0], [1], [0, 0, 1, 1], [], []>} : vector<3x72xf32>, vector<72x256xf32>, vector<3x256xf32> -> vector<3x256xf32>
    %c0_3 = arith.constant 0 : index
    %c0_4 = arith.constant 0 : index
    %3 = vector.load %arg3[%c0_3, %c0_4] : memref<3x1xf32, #tpu.memory_space<vmem>>, vector<3x1xf32>
    %4 = vector.broadcast %3 : vector<3x1xf32> to vector<3x256xf32>
    %5 = arith.addf %2, %4 : vector<3x256xf32>
    %cst_5 = arith.constant 0.000000e+00 : f32
    %6 = vector.broadcast %cst_5 : f32 to vector<3x256xf32>
    %7 = arith.subf %6, %5 : vector<3x256xf32>
    %8 = math.exp %7 : vector<3x256xf32>
    %cst_6 = arith.constant 1.000000e+00 : f32
    %9 = vector.broadcast %cst_6 : f32 to vector<3x256xf32>
    %10 = arith.addf %9, %8 : vector<3x256xf32>
    %cst_7 = arith.constant 1.000000e+00 : f32
    %11 = vector.broadcast %cst_7 : f32 to vector<3x256xf32>
    %12 = arith.divf %11, %10 : vector<3x256xf32>
    %c0_8 = arith.constant 0 : index
    %c0_9 = arith.constant 0 : index
    %13 = vector.load %arg4[%c0_8, %c0_9] : memref<3x256xf32, #tpu.memory_space<vmem>>, vector<3x256xf32>
    tpu.vector_store %arg4[%c0_8, %c0_9], %12 {strides = array<i32>} : memref<3x256xf32, #tpu.memory_space<vmem>>, vector<3x256xf32>,
    return
  }
  func.func @transform_0(%arg0: i32) -> (i32, i32) {
    %c0_i32 = arith.constant 0 : i32
    %c0_i32_0 = arith.constant 0 : i32
    %c0_i32_1 = arith.constant 0 : i32
    return %c0_i32, %c0_i32_0 : i32, i32
  }
  func.func @transform_1(%arg0: i32) -> (i32, i32) {
    %c0_i32 = arith.constant 0 : i32
    %c0_i32_0 = arith.constant 0 : i32
    return %c0_i32, %arg0 : i32, i32
  }
  func.func @transform_2(%arg0: i32) -> (i32, i32) {
    %c0_i32 = arith.constant 0 : i32
    %c0_i32_0 = arith.constant 0 : i32
    %c0_i32_1 = arith.constant 0 : i32
    return %c0_i32, %c0_i32_0 : i32, i32
  }
  func.func @transform_3(%arg0: i32) -> (i32, i32) {
    %c0_i32 = arith.constant 0 : i32
    %c0_i32_0 = arith.constant 0 : i32
    return %c0_i32, %arg0 : i32, i32
  }
}

</mosaic_0001>

<bundles_post_ra>
// kernel: _forward_impl.44
= control target key start
LH: loop header
LB: loop body
LE: loop exit
PB: predicated region body
PF: predicated region fallthrough
CT: control target
= control target key end

     0   :  { %s470_s12 = smov 0   ;;  %s472_s13 = smov 0   ;;  %s529_s0 = inlined_call_operand.vmem [shape: f32[8,27], index: 0, kind: input, shape index: {}]   ;;  %s530_s1 = inlined_call_operand.vmem [shape: f32[27,512], index: 1, kind: input, shape index: {}]   ;;  %s531_s2 = inlined_call_operand.vmem [shape: f32[8,1], index: 2, kind: input, shape index: {}]   ;;  %s532_s3 = inlined_call_operand.vmem [shape: f32[8,512], index: 3, kind: output, shape index: {}]  }
   0x1   :  { %s474_s14 = smov 0  }
   0x2 LB: > { %s368_s15 = sadd.s32 4294967295, %s445_s14   ;;  %s487_s16 = sadd.s32 1, %s445_s14   ;;  %s445_s14 = sphi %s474_s14, %s535_s14   ;;  %s441_s13 = sphi %s472_s13, %s534_s13   ;;  %s437_s12 = sphi %s470_s12, %s533_s12  }
   0x3   : > { %s38_s17 = ssub.s32 %s445_s14, %s487_s16  ;;  %s41_s18 = sadd.s32 1, %s441_s13 }
   0x4   : > { %p39_p0 = scmp.eq.s32.totalorder %s38_s17, 0  ;;  %p48_p1 = scmp.ne.s32.totalorder %s441_s13, %s437_s12 }
   0x5   : > { %p49_p2 = scmp.eq.s32.totalorder %s445_s14, 0  ;;  %p371_p4 = scmp.ge.s32.totalorder %s445_s14, 2 }
   0x6   : > { %s496_s19 = scalar_select %p39_p0, %s441_s13, %s41_s18  }
   0x7   : > { %p50_p3 = por %p49_p2, %p48_p1  ;;  %127 = sbr.rel (%p371_p4) target bundleno = 22 (0x16), region = 24 }
   0xe   : > { %130 = sbr.rel (!%p50_p3) target bundleno = 22 (0x16), region = 28  ;;  %s132_s20 = sand.u32 (%p50_p3), 1, %s441_s13  }
   0xf   : > { %s384_s21 = sshll.u32 (%p50_p3), %s445_s14, 4  ;;  %s372_s22 = sshll.u32 (%p50_p3), %s132_s20, 6 }
  0x10   : > { %s137_s25 = scalar_lea.vmem (%p50_p3), %s530_s1, %s384_s21  ;;  %s134_s26 = scalar_lea.vmem (%p50_p3), [#allocation2], %s372_s22 }
  0x11   : > { %v150_v0 = vld [vmem:[%s137_s25] sm:$0xff] (%p50_p3)  ;;  %v152_v1 = vld [vmem:[%s137_s25 + $0x8] sm:$0xff] (%p50_p3) }
  0x12   : > { %v154_v2 = vld [vmem:[%s137_s25 + $0x20] sm:$0xff] (%p50_p3)  ;;  %151 = vst [vmem:[%s134_s26] sm:$0xff] (%p50_p3), %v150_v0  ;;  %153 = vst [vmem:[%s134_s26 + $0x8] sm:$0xff] (%p50_p3), %v152_v1  ;;  %v156_v3 = vld [vmem:[%s137_s25 + $0x28] sm:$0xff] (%p50_p3) }
  0x13   : > { %155 = vst [vmem:[%s134_s26 + $0x10] sm:$0xff] (%p50_p3), %v154_v2  ;;  %v158_v4 = vld [vmem:[%s137_s25 + $0x40] sm:$0xff] (%p50_p3)  ;;  %v160_v5 = vld [vmem:[%s137_s25 + $0x48] sm:$0xff] (%p50_p3)  ;;  %157 = vst [vmem:[%s134_s26 + $0x18] sm:$0xff] (%p50_p3), %v156_v3 }
  0x14   : > { %159 = vst [vmem:[%s134_s26 + $0x20] sm:$0xff] (%p50_p3), %v158_v4  ;;  %161 = vst [vmem:[%s134_s26 + $0x28] sm:$0xff] (%p50_p3), %v160_v5  ;;  %v162_v6 = vld [vmem:[%s137_s25 + $0x60] sm:$0xff] (%p50_p3)  ;;  %v164_v7 = vld [vmem:[%s137_s25 + $0x68] sm:$0xff] (%p50_p3) }
  0x15   : > { %163 = vst [vmem:[%s134_s26 + $0x30] sm:$0xff] %v162_v6  ;;  %165 = vst [vmem:[%s134_s26 + $0x38] sm:$0xff] %v164_v7 }
  0x16 PF: > { %p375_p5 = scmp.ge.s32.totalorder %s445_s14, 1  ;;  %p170_p6 = scmp.lt.s32.totalorder %s445_s14, 3 }
  0x18   : > { %p171_p7 = pnand %p375_p5, %p170_p6 }
  0x19   : > { %s177_s27 = sand.u32 (!%p171_p7), 1, %s437_s12   ;;  %v447_v8 = vmov (!%p171_p7), 0.0   ;;  %v216_v9 = vld [vmem:[%s531_s2] sm:$0xff] (!%p171_p7)  ;;  %vm226_vm0 = vcmask (!%p171_p7), 1042432   ;;  %v448_v10 = vmov (!%p171_p7), 0   ;;  %vm449_vm1 = vmmov (!%p171_p7), 1  }
  0x1a   : > { %174 = sbr.rel (%p171_p7) target bundleno = 255 (0xff), region = 51  ;;  %s376_s28 = sshll.u32 (!%p171_p7), %s177_s27, 6  ;;  %297 = vmatprep.mubr.f32.mxu0 (!%p171_p7), %v447_v8  ;;  %422 = vset.pattern.permute.xlu0 (!%p171_p7), %v448_v10  ;;  %vm390_vm2 = vmpackc.low (!%p171_p7), %vm226_vm0, %vm449_vm1  ;;  %v207_v23 = vld [vmem:[%s529_s0] sm:$0xff] (!%p171_p7)  ;;  %vm222_vm3 = vcmask (!%p171_p7), 220160  }
  0x1b   : > { %s179_s4 = scalar_lea.vmem (!%p171_p7), [#allocation2], %s376_s28  ;;  %219 = vperm.xlu0 (!%p171_p7), %422, %v216_v9   ;;  %s377_s7 = sshll.u32 (!%p171_p7), %s368_s15, 1 }
  0x1c   : > { %v209_v11 = vld [vmem:[%s179_s4 + $0x8] sm:$0xff] (!%p171_p7)  ;;  %v211_v12 = vld [vmem:[%s179_s4 + $0x18] sm:$0xff] (!%p171_p7)  ;;  %v208_v13 = vld [vmem:[%s179_s4] sm:$0xff] (!%p171_p7)  ;;  %p202_p8 = scmp.lt.s32.totalorder (!%p171_p7), %s377_s7, 3 }
  0x1d   : > { %v385_v14 = vpack.c.bf16 (!%p171_p7), %v211_v12, %v209_v11  ;;  %v210_v15 = vld [vmem:[%s179_s4 + $0x10] sm:$0xff] (!%p171_p7)  ;;  %v213_v16 = vld [vmem:[%s179_s4 + $0x28] sm:$0xff] (!%p171_p7)  ;;  %v215_v17 = vld [vmem:[%s179_s4 + $0x38] sm:$0x7] (!%p171_p7) }
  0x1e   : > { %v387_v18 = vpack.c.bf16 (!%p171_p7), %v210_v15, %v208_v13  ;;  %v389_v19 = vpack.c.bf16 (!%p171_p7), %v215_v17, %v213_v16  ;;  %v212_v20 = vld [vmem:[%s179_s4 + $0x20] sm:$0xff] (!%p171_p7)  ;;  %v214_v21 = vld [vmem:[%s179_s4 + $0x30] sm:$0x7] (!%p171_p7) }
  0x1f   : > { %386 = vmatprep.subr.bf16.mxu0 (!%p171_p7), %v385_v14  ;;  %v392_v22 = vpack.c.bf16 (!%p171_p7), %v214_v21, %v212_v20 }
  0x20   : > { %388 = vmatpush1.bf16.msra.mxu0 (!%p171_p7), %v387_v18 }
  0x21   : > { %391 = vmatprep.subr.msk.bf16.mxu0 %vm390_vm2, %v389_v19  ;;  %s537_s7 = smov (!%p202_p8, %s377_s7), 3 }
  0x22   : > { %s378_s8 = sshll.u32 %s537_s7, 3 }
  0x23   : > { %s205_s11 = scalar_lea.vmem %s532_s3, %s378_s8 }
  0x24   : > { %394 = vmatpush1.bf16.msk.msra.mxu0 %vm390_vm2, %v392_v22 }
  0x27   : > { %381 = vmatmul.mubr.msk.f32.vlgmr.msra.gmra.mrb[0].mxu0 %vm222_vm3, %v207_v23 }
  0x9a   : > { %v220_v24 = vpop.permute.xlu0 %219 }
  0xfa   : > { %v299_v25 = vpop.f32.mrb[0].mxu0 }
  0xfb   : > { %v300_v26 = vadd.f32 %v299_v25, %v220_v24  ;;  %v301_v27 = vpop.f32.mrb[1].mxu0 }
  0xfc   : > { %v302_v28 = vadd.f32 %v301_v27, %v220_v24 }
  0xfd   : > { %304 = vst [vmem:[%s205_s11] sm:$0xff] %v300_v26 }
  0xfe   : > { %305 = vst [vmem:[%s205_s11 + $0x8] sm:$0xff] %v302_v28 }
  0xff PF: > { %p10_p9 = scmp.ge.s32.totalorder %s487_s16, 4   ;;  %s533_s12 = smov %s441_s13 }
 0x100   : > { %s534_s13 = smov %s496_s19  ;;  %s535_s14 = smov %s487_s16 }
 0x101   :  { %12 = sbr.rel (!%p10_p9) target bundleno = 2 (0x2), region = 90 }

// kernel: _forward_impl.45
= control target key start
LH: loop header
LB: loop body
LE: loop exit
PB: predicated region body
PF: predicated region fallthrough
CT: control target
= control target key end

     0   :  { %s1156_s17 = smov 0   ;;  %s1158_s18 = smov 0   ;;  %s1352_s0 = inlined_call_operand.vmem [shape: f32[8,512], index: 0, kind: input, shape index: {}]   ;;  %s1353_s1 = inlined_call_operand.vmem [shape: f32[8,128], index: 1, kind: input, shape index: {}]   ;;  %s1354_s2 = inlined_call_operand.vmem [shape: f32[128,512], index: 2, kind: input, shape index: {}]   ;;  %s1355_s3 = inlined_call_operand.vmem [shape: f32[1,512], index: 3, kind: input, shape index: {}]   ;;  %s1356_s4 = inlined_call_operand.vmem [shape: f32[1,512], index: 4, kind: input, shape index: {}]   ;;  %s1357_s5 = inlined_call_operand.vmem [shape: f32[8,512], index: 5, kind: input, shape index: {}]   ;;  %s1358_s6 = inlined_call_operand.vmem [shape: f32[8,8], index: 6, kind: input, shape index: {}]   ;;  %s1359_s7 = inlined_call_operand.vmem [shape: f32[8,8], index: 7, kind: input, shape index: {}]   ;;  %s1360_s8 = inlined_call_operand.vmem [shape: f32[8,1], index: 8, kind: input, shape index: {}]   ;;  %s1361_s9 = inlined_call_operand.vmem [shape: f32[8,1], index: 9, kind: input, shape index: {}]   ;;  %s1362_s10 = inlined_call_operand.vmem [shape: f32[8,1], index: 10, kind: input, shape index: {}]   ;;  %s1363_s11 = inlined_call_operand.vmem [shape: f32[8,512], index: 11, kind: output, shape index: {}]  }
   0x1   :  { %s1160_s19 = smov 0  }
   0x2 LB: > { %s973_s20 = sadd.s32 4294967295, %s1091_s19   ;;  %s1173_s21 = sadd.s32 1, %s1091_s19   ;;  %s1091_s19 = sphi %s1160_s19, %s1366_s19   ;;  %s1087_s18 = sphi %s1158_s18, %s1365_s18   ;;  %s1083_s17 = sphi %s1156_s17, %s1364_s17  }
   0x3   : > { %s72_s22 = ssub.s32 %s1091_s19, %s1173_s21  ;;  %s75_s23 = sadd.s32 1, %s1087_s18 }
   0x4   : > { %p73_p0 = scmp.eq.s32.totalorder %s72_s22, 0  ;;  %p82_p1 = scmp.ne.s32.totalorder %s1087_s18, %s1083_s17 }
   0x5   : > { %p83_p2 = scmp.eq.s32.totalorder %s1091_s19, 0  ;;  %p976_p4 = scmp.ge.s32.totalorder %s1091_s19, 2 }
   0x6   : > { %s1182_s24 = scalar_select %p73_p0, %s1087_s18, %s75_s23  }
   0x7   : > { %p84_p3 = por %p83_p2, %p82_p1  ;;  %335 = sbr.rel (%p976_p4) target bundleno = 34 (0x22), region = 40 }
   0xe   : > { %347 = sbr.rel (!%p84_p3) target bundleno = 34 (0x22), region = 48  ;;  %s349_s25 = sand.u32 (%p84_p3), 1, %s1087_s18  }
   0xf   : > { %s994_s26 = sshll.u32 (%p84_p3), %s1091_s19, 4  ;;  %s977_s27 = sshll.u32 (%p84_p3), %s349_s25, 8 }
  0x10   : > { %s1190_s30 = scalar_lea.vmem (%p84_p3), %s1354_s2, %s994_s26  ;;  %s1195_s12 = scalar_lea.vmem (%p84_p3), [#allocation2], %s977_s27 }
  0x11   : > { %v367_v0 = vld [vmem:[%s1190_s30] sm:$0xff] (%p84_p3)  ;;  %v369_v1 = vld [vmem:[%s1190_s30 + $0x8] sm:$0xff] (%p84_p3) }
  0x12   : > { %v371_v2 = vld [vmem:[%s1190_s30 + $0x20] sm:$0xff] (%p84_p3)  ;;  %368 = vst [vmem:[%s1195_s12] sm:$0xff] (%p84_p3), %v367_v0  ;;  %370 = vst [vmem:[%s1195_s12 + $0x8] sm:$0xff] (%p84_p3), %v369_v1  ;;  %v373_v3 = vld [vmem:[%s1190_s30 + $0x28] sm:$0xff] (%p84_p3) }
  0x13   : > { %372 = vst [vmem:[%s1195_s12 + $0x10] sm:$0xff] (%p84_p3), %v371_v2  ;;  %v375_v4 = vld [vmem:[%s1190_s30 + $0x40] sm:$0xff] (%p84_p3)  ;;  %v377_v5 = vld [vmem:[%s1190_s30 + $0x48] sm:$0xff] (%p84_p3)  ;;  %374 = vst [vmem:[%s1195_s12 + $0x18] sm:$0xff] (%p84_p3), %v373_v3 }
  0x14   : > { %376 = vst [vmem:[%s1195_s12 + $0x20] sm:$0xff] (%p84_p3), %v375_v4  ;;  %378 = vst [vmem:[%s1195_s12 + $0x28] sm:$0xff] (%p84_p3), %v377_v5  ;;  %v379_v6 = vld [vmem:[%s1190_s30 + $0x60] sm:$0xff] (%p84_p3)  ;;  %v381_v7 = vld [vmem:[%s1190_s30 + $0x68] sm:$0xff] (%p84_p3) }
  0x15   : > { %v383_v8 = vld [vmem:[%s1190_s30 + $0x80] sm:$0xff]  ;;  %380 = vst [vmem:[%s1195_s12 + $0x30] sm:$0xff] %v379_v6  ;;  %382 = vst [vmem:[%s1195_s12 + $0x38] sm:$0xff] %v381_v7  ;;  %v385_v9 = vld [vmem:[%s1190_s30 + $0x88] sm:$0xff] }
  0x16   : > { %384 = vst [vmem:[%s1195_s12 + $0x40] sm:$0xff] %v383_v8  ;;  %v387_v10 = vld [vmem:[%s1190_s30 + $0xa0] sm:$0xff]  ;;  %v389_v11 = vld [vmem:[%s1190_s30 + $0xa8] sm:$0xff]  ;;  %386 = vst [vmem:[%s1195_s12 + $0x48] sm:$0xff] %v385_v9 }
  0x17   : > { %388 = vst [vmem:[%s1195_s12 + $0x50] sm:$0xff] %v387_v10  ;;  %390 = vst [vmem:[%s1195_s12 + $0x58] sm:$0xff] %v389_v11  ;;  %v391_v12 = vld [vmem:[%s1190_s30 + $0xc0] sm:$0xff]  ;;  %v393_v13 = vld [vmem:[%s1190_s30 + $0xc8] sm:$0xff] }
  0x18   : > { %v395_v14 = vld [vmem:[%s1190_s30 + $0xe0] sm:$0xff]  ;;  %392 = vst [vmem:[%s1195_s12 + $0x60] sm:$0xff] %v391_v12  ;;  %394 = vst [vmem:[%s1195_s12 + $0x68] sm:$0xff] %v393_v13  ;;  %v397_v15 = vld [vmem:[%s1190_s30 + $0xe8] sm:$0xff] }
  0x19   : > { %396 = vst [vmem:[%s1195_s12 + $0x70] sm:$0xff] %v395_v14  ;;  %v399_v16 = vld [vmem:[%s1190_s30 + $0x100] sm:$0xff]  ;;  %v401_v17 = vld [vmem:[%s1190_s30 + $0x108] sm:$0xff]  ;;  %398 = vst [vmem:[%s1195_s12 + $0x78] sm:$0xff] %v397_v15 }
  0x1a   : > { %400 = vst [vmem:[%s1195_s12 + $0x80] sm:$0xff] %v399_v16  ;;  %402 = vst [vmem:[%s1195_s12 + $0x88] sm:$0xff] %v401_v17  ;;  %v403_v18 = vld [vmem:[%s1190_s30 + $0x120] sm:$0xff]  ;;  %v405_v19 = vld [vmem:[%s1190_s30 + $0x128] sm:$0xff] }
  0x1b   : > { %v407_v20 = vld [vmem:[%s1190_s30 + $0x140] sm:$0xff]  ;;  %404 = vst [vmem:[%s1195_s12 + $0x90] sm:$0xff] %v403_v18  ;;  %406 = vst [vmem:[%s1195_s12 + $0x98] sm:$0xff] %v405_v19  ;;  %v409_v21 = vld [vmem:[%s1190_s30 + $0x148] sm:$0xff] }
  0x1c   : > { %408 = vst [vmem:[%s1195_s12 + $0xa0] sm:$0xff] %v407_v20  ;;  %v411_v22 = vld [vmem:[%s1190_s30 + $0x160] sm:$0xff]  ;;  %v413_v23 = vld [vmem:[%s1190_s30 + $0x168] sm:$0xff]  ;;  %410 = vst [vmem:[%s1195_s12 + $0xa8] sm:$0xff] %v409_v21 }
  0x1d   : > { %412 = vst [vmem:[%s1195_s12 + $0xb0] sm:$0xff] %v411_v22  ;;  %414 = vst [vmem:[%s1195_s12 + $0xb8] sm:$0xff] %v413_v23  ;;  %v415_v24 = vld [vmem:[%s1190_s30 + $0x180] sm:$0xff]  ;;  %v417_v25 = vld [vmem:[%s1190_s30 + $0x188] sm:$0xff] }
  0x1e   : > { %v419_v26 = vld [vmem:[%s1190_s30 + $0x1a0] sm:$0xff]  ;;  %416 = vst [vmem:[%s1195_s12 + $0xc0] sm:$0xff] %v415_v24  ;;  %418 = vst [vmem:[%s1195_s12 + $0xc8] sm:$0xff] %v417_v25  ;;  %v421_v27 = vld [vmem:[%s1190_s30 + $0x1a8] sm:$0xff] }
  0x1f   : > { %420 = vst [vmem:[%s1195_s12 + $0xd0] sm:$0xff] %v419_v26  ;;  %v423_v28 = vld [vmem:[%s1190_s30 + $0x1c0] sm:$0xff]  ;;  %v425_v29 = vld [vmem:[%s1190_s30 + $0x1c8] sm:$0xff]  ;;  %422 = vst [vmem:[%s1195_s12 + $0xd8] sm:$0xff] %v421_v27 }
  0x20   : > { %424 = vst [vmem:[%s1195_s12 + $0xe0] sm:$0xff] %v423_v28  ;;  %426 = vst [vmem:[%s1195_s12 + $0xe8] sm:$0xff] %v425_v29  ;;  %v427_v30 = vld [vmem:[%s1190_s30 + $0x1e0] sm:$0xff]  ;;  %v429_v31 = vld [vmem:[%s1190_s30 + $0x1e8] sm:$0xff] }
  0x21   : > { %428 = vst [vmem:[%s1195_s12 + $0xf0] sm:$0xff] %v427_v30  ;;  %430 = vst [vmem:[%s1195_s12 + $0xf8] sm:$0xff] %v429_v31 }
  0x22 PF: > { %p980_p5 = scmp.ge.s32.totalorder %s1091_s19, 1  ;;  %p460_p6 = scmp.lt.s32.totalorder %s1091_s19, 3 }
  0x24   : > { %p461_p7 = pnand %p980_p5, %p460_p6 }
  0x25   : > { %v557_v32 = vld [vmem:[%s1353_s1] sm:$0xff] (!%p461_p7)  ;;  %vm558_vm0 = vcmask (!%p461_p7), 64512   ;;  %s467_s22 = sand.u32 (!%p461_p7), 1, %s1083_s17   ;;  %v1093_v34 = vmov (!%p461_p7), 0.0   ;;  %vm1094_vm1 = vmmov (!%p461_p7), 0   ;;  %s982_s25 = sshll.u32 (!%p461_p7), %s973_s20, 1  ;;  %v817_v30 = vlaneseq (!%p461_p7) }
  0x26   : > { %464 = sbr.rel (%p461_p7) target bundleno = 487 (0x1e7), region = 83  ;;  %v556_v33 = vld [vmem:[%s1359_s7] sm:$0xff] (!%p461_p7)  ;;  %997 = vmatprep.subr.mxu0 (!%p461_p7), %v1093_v34  ;;  %999 = vmatprep.mubr.msk.f32.mxu0 (!%p461_p7), %vm1094_vm1, %v1093_v34  ;;  %s981_s23 = sshll.u32 (!%p461_p7), %s467_s22, 8  ;;  %v1095_v24 = vmov (!%p461_p7), 0  }
  0x27   : > { %998 = vmatpush3.msra.mxu0 (!%p461_p7), %v557_v32  ;;  %p525_p8 = scmp.lt.s32.totalorder (!%p461_p7), %s982_s25, 3  ;;  %728 = vmatprep.mubr.f32.mxu1 (!%p461_p7), %v1093_v34  ;;  %s1270_s26 = scalar_lea.vmem (!%p461_p7), [#allocation2], %s981_s23  ;;  %v553_v21 = vld [vmem:[%s1358_s6] sm:$0xff] (!%p461_p7)  ;;  %v818_v31 = vshrl.u32 (!%p461_p7), %v817_v30, 7 }
  0x28   : > { %1000 = vmatmul.mubr.msk.f32.vlgmr.msra.gmra.mrb[0].mxu0 (!%p461_p7), %vm558_vm0, %v556_v33  ;;  %v633_v35 = vld [vmem:[%s1270_s26 + $0x8] sm:$0xff] (!%p461_p7)  ;;  %v635_v36 = vld [vmem:[%s1270_s26 + $0x18] sm:$0xff] (!%p461_p7)  ;;  %v632_v37 = vld [vmem:[%s1270_s26] sm:$0xff] (!%p461_p7)  ;;  %1063 = vset.pattern.permute.xlu0 (!%p461_p7), %v1095_v24 }
  0x29   : > { %v1002_v38 = vpack.c.bf16 (!%p461_p7), %v635_v36, %v633_v35  ;;  %v634_v39 = vld [vmem:[%s1270_s26 + $0x10] sm:$0xff] (!%p461_p7)  ;;  %v637_v40 = vld [vmem:[%s1270_s26 + $0x28] sm:$0xff] (!%p461_p7)  ;;  %v639_v41 = vld [vmem:[%s1270_s26 + $0x38] sm:$0xff] (!%p461_p7)  ;;  %802 = vmatprep.mubr.f32.mxu0 (!%p461_p7), %v1093_v34  ;;  %1064 = vset.pattern.permute.xlu1 (!%p461_p7), %v1095_v24  ;;  %v819_v32 = vsub.s32 (!%p461_p7), 0, %v818_v31  ;;  %v823_v33 = vsub.s32 (!%p461_p7), 1, %v818_v31 }
  0x2a   : > { %v1004_v42 = vpack.c.bf16 (!%p461_p7), %v634_v39, %v632_v37  ;;  %v1006_v43 = vpack.c.bf16 (!%p461_p7), %v639_v41, %v637_v40  ;;  %v636_v44 = vld [vmem:[%s1270_s26 + $0x20] sm:$0xff] (!%p461_p7)  ;;  %v638_v45 = vld [vmem:[%s1270_s26 + $0x30] sm:$0xff] (!%p461_p7)  ;;  %v641_v46 = vld [vmem:[%s1270_s26 + $0x48] sm:$0xff] (!%p461_p7) }
  0x2b   : > { %1003 = vmatprep.subr.bf16.mxu1 (!%p461_p7), %v1002_v38  ;;  %v643_v47 = vld [vmem:[%s1270_s26 + $0x58] sm:$0xff] (!%p461_p7)  ;;  %v1008_v48 = vpack.c.bf16 (!%p461_p7), %v638_v45, %v636_v44  ;;  %v640_v50 = vld [vmem:[%s1270_s26 + $0x40] sm:$0xff] (!%p461_p7)  ;;  %v642_v51 = vld [vmem:[%s1270_s26 + $0x50] sm:$0xff] (!%p461_p7) }
  0x2c   : > { %1005 = vmatpush1.bf16.msra.mxu1 (!%p461_p7), %v1004_v42  ;;  %v1010_v49 = vpack.c.bf16 (!%p461_p7), %v643_v47, %v641_v46  ;;  %v645_v52 = vld [vmem:[%s1270_s26 + $0x68] sm:$0xff] (!%p461_p7)  ;;  %v647_v53 = vld [vmem:[%s1270_s26 + $0x78] sm:$0xff] (!%p461_p7)  ;;  %v1012_v54 = vpack.c.bf16 (!%p461_p7), %v642_v51, %v640_v50  ;;  %v644_v56 = vld [vmem:[%s1270_s26 + $0x60] sm:$0xff] (!%p461_p7) }
  0x2d   : > { %s1368_s25 = smov (!%p525_p8, %s982_s25), 3  ;;  %1007 = vmatprep.subr.bf16.mxu1 %v1006_v43  ;;  %v1014_v55 = vpack.c.bf16 %v647_v53, %v645_v52  ;;  %v646_v57 = vld [vmem:[%s1270_s26 + $0x70] sm:$0xff]  ;;  %v649_v59 = vld [vmem:[%s1270_s26 + $0x88] sm:$0xff]  ;;  %v651_v60 = vld [vmem:[%s1270_s26 + $0x98] sm:$0xff] }
  0x2e   : > { %s1285_s17 = sshll.u32 %s1368_s25, 3  ;;  %v1016_v62 = vpack.c.bf16 %v646_v57, %v644_v56  ;;  %v1018_v63 = vpack.c.bf16 %v651_v60, %v649_v59  ;;  %v648_v0 = vld [vmem:[%s1270_s26 + $0x80] sm:$0xff]  ;;  %v650_v1 = vld [vmem:[%s1270_s26 + $0x90] sm:$0xff]  ;;  %v653_v2 = vld [vmem:[%s1270_s26 + $0xa8] sm:$0xff] }
  0x2f   : > { %s528_s27 = scalar_lea.vmem %s1352_s0, %s1285_s17  ;;  %v655_v3 = vld [vmem:[%s1270_s26 + $0xb8] sm:$0xff]  ;;  %v1020_v4 = vpack.c.bf16 %v650_v1, %v648_v0  ;;  %v652_v6 = vld [vmem:[%s1270_s26 + $0xa0] sm:$0xff]  ;;  %v654_v7 = vld [vmem:[%s1270_s26 + $0xb0] sm:$0xff]  ;;  %s545_s29 = scalar_lea.vmem %s1357_s5, %s1285_s17 }
  0x30   : > { %1009 = vmatpush1.bf16.msra.mxu1 %v1008_v48  ;;  %v555_v58 = vld [vmem:[%s528_s27 + $0x8] sm:$0xff]  ;;  %v554_v61 = vld [vmem:[%s528_s27] sm:$0xff]  ;;  %v1022_v5 = vpack.c.bf16 %v655_v3, %v653_v2  ;;  %v659_v9 = vld [vmem:[%s1270_s26 + $0xd8] sm:$0xff]  ;;  %v1024_v10 = vpack.c.bf16 %v654_v7, %v652_v6  ;;  %s539_s27 = scalar_lea.vmem %s1356_s4, %s1368_s25  ;;  %s551_s13 = scalar_lea.vmem %s1363_s11, %s1285_s17 }
  0x31   : > { %1011 = vmatprep.subr.bf16.mxu1 %v1010_v49  ;;  %738 = vmatprep.subr.mxu0 %v555_v58  ;;  %v657_v8 = vld [vmem:[%s1270_s26 + $0xc8] sm:$0xff]  ;;  %v656_v12 = vld [vmem:[%s1270_s26 + $0xc0] sm:$0xff]  ;;  %v658_v13 = vld [vmem:[%s1270_s26 + $0xd0] sm:$0xff] }
  0x32   : > { %739 = vmatpush1.msra.mxu0 %v554_v61  ;;  %v1026_v11 = vpack.c.bf16 %v659_v9, %v657_v8  ;;  %v661_v14 = vld [vmem:[%s1270_s26 + $0xe8] sm:$0xff]  ;;  %v663_v15 = vld [vmem:[%s1270_s26 + $0xf8] sm:$0xff]  ;;  %v1028_v16 = vpack.c.bf16 %v658_v13, %v656_v12  ;;  %v660_v18 = vld [vmem:[%s1270_s26 + $0xe0] sm:$0xff] }
  0x33   : > { %v1030_v17 = vpack.c.bf16 %v663_v15, %v661_v14  ;;  %v662_v19 = vld [vmem:[%s1270_s26 + $0xf0] sm:$0xff]  ;;  %991 = vmatmul.mubr.msk.f32.vlgmr.msra.gmra.mrb[2].mxu0 %vm558_vm0, %v553_v21  ;;  %v809_v22 = vld [vmem:[%s1360_s8] sm:$0xff]  ;;  %s534_s26 = scalar_lea.vmem %s1355_s3, %s1368_s25  ;;  %v862_v58 = vld [vmem:[%s545_s29 + $0x8] sm:$0xff] }
  0x34   : > { %1013 = vmatpush1.bf16.msra.mxu1 %v1012_v54  ;;  %v1032_v20 = vpack.c.bf16 %v662_v19, %v660_v18  ;;  %v853_v23 = vld [vmem:[%s1362_s10] sm:$0xff]  ;;  %813 = vperm.xlu0 %1063, %v809_v22  }
  0x35   : > { %1015 = vmatprep.subr.bf16.mxu1 %v1014_v55  ;;  %856 = vperm.xlu1 %1064, %v853_v23   ;;  %v831_v25 = vld [vmem:[%s1361_s9] sm:$0xff] }
  0x36   : > { %v810_v35 = vld [vmem:[%s534_s26] sm:$0x3] }
  0x37   : > { %v832_v36 = vld [vmem:[%s539_s27] sm:$0x3]  ;;  %v820_v37 = vrot.slane %v810_v35, %v819_v32  ;;  %v824_v38 = vrot.slane %v810_v35, %v823_v33 }
  0x38   : > { %1017 = vmatpush1.bf16.msra.mxu1 %v1016_v62  ;;  %835 = vperm.xlu0 %1063, %v831_v25   ;;  %v842_v39 = vrot.slane %v832_v36, %v819_v32  ;;  %v846_v41 = vrot.slane %v832_v36, %v823_v33  ;;  %v861_v57 = vld [vmem:[%s545_s29] sm:$0xff] }
  0x39   : > { %1019 = vmatprep.subr.bf16.mxu1 %v1018_v63 }
  0x3c   : > { %1021 = vmatpush1.bf16.msra.mxu1 %v1020_v4 }
  0x3d   : > { %1023 = vmatprep.subr.bf16.mxu1 %v1022_v5 }
  0x40   : > { %1025 = vmatpush1.bf16.msra.mxu1 %v1024_v10 }
  0x41   : > { %1027 = vmatprep.subr.bf16.mxu1 %v1026_v11 }
  0x44   : > { %1029 = vmatpush1.bf16.msra.mxu1 %v1028_v16 }
  0x45   : > { %1031 = vmatprep.subr.bf16.mxu1 %v1030_v17 }
  0x48   : > { %1033 = vmatpush1.bf16.msra.mxu1 %v1032_v20 }
  0xb3   : > { %v814_v34 = vpop.permute.xlu0 %813 }
  0xb4   : > { %v827_v43 = vmul.f32 %v820_v37, %v814_v34  ;;  %v828_v46 = vmul.f32 %v824_v38, %v814_v34  ;;  %v857_v52 = vpop.permute.xlu1 %856 }
  0xb7   : > { %v836_v40 = vpop.permute.xlu0 %835 }
  0xb8   : > { %v849_v48 = vmul.f32 %v842_v39, %v836_v40  ;;  %v850_v50 = vmul.f32 %v846_v41, %v836_v40 }
  0xfb   : > { %v628_v26 = vpop.f32.mrb[0].mxu0 }
  0xfc   : > { %v1001_v27 = vpop.f32.mrb[1].mxu0  ;;  %729 = vmatmul.mubr.f32.vlgmr.msra.gmra.mrb[0].mxu1 %v628_v26 }
 0x106   : > { %v804_v28 = vpop.f32.mrb[2].mxu0 }
 0x107   : > { %v806_v29 = vpop.f32.mrb[3].mxu0 }
 0x1cf   : > { %v730_v42 = vpop.f32.mrb[0].mxu1 }
 0x1d0   : > { %v805_v44 = vadd.f32 %v804_v28, %v730_v42  ;;  %v732_v45 = vpop.f32.mrb[1].mxu1 }
 0x1d1   : > { %v807_v47 = vadd.f32 %v806_v29, %v732_v45 }
 0x1d2   : > { %v829_v49 = vadd.f32 %v827_v43, %v805_v44 }
 0x1d3   : > { %v830_v51 = vadd.f32 %v828_v46, %v807_v47 }
 0x1d4   : > { %v851_v53 = vadd.f32 %v849_v48, %v829_v49 }
 0x1d5   : > { %v852_v54 = vadd.f32 %v850_v50, %v830_v51 }
 0x1d6   : > { %v859_v55 = vadd.f32 %v857_v52, %v851_v53 }
 0x1d7   : > { %v860_v56 = vadd.f32 %v857_v52, %v852_v54 }
 0x1d8   : > { %1065 = vtanh.f32 %v859_v55 }
 0x1d9   : > { %1067 = vtanh.f32 %v860_v56 }
 0x1e2   : > { %v1066_v59 = vpop.eup %1065 }
 0x1e3   : > { %v1068_v60 = vpop.eup %1067  ;;  %v865_v61 = vadd.f32 %v1066_v59, %v861_v57 }
 0x1e4   : > { %v866_v62 = vadd.f32 %v1068_v60, %v862_v58 }
 0x1e5   : > { %867 = vst [vmem:[%s551_s13] sm:$0xff] %v865_v61 }
 0x1e6   : > { %868 = vst [vmem:[%s551_s13 + $0x8] sm:$0xff] %v866_v62 }
 0x1e7 PF: > { %p18_p9 = scmp.ge.s32.totalorder %s1173_s21, 4   ;;  %s1364_s17 = smov %s1087_s18 }
 0x1e8   : > { %s1365_s18 = smov %s1182_s24  ;;  %s1366_s19 = smov %s1173_s21 }
 0x1e9   :  { %20 = sbr.rel (!%p18_p9) target bundleno = 2 (0x2), region = 134 }

// kernel: _forward_impl.46
= control target key start
LH: loop header
LB: loop body
LE: loop exit
PB: predicated region body
PF: predicated region fallthrough
CT: control target
= control target key end

     0   :  { %s501_s12 = smov 0   ;;  %s503_s13 = smov 0   ;;  %s599_s0 = inlined_call_operand.vmem [shape: f32[8,72], index: 0, kind: input, shape index: {}]   ;;  %s600_s1 = inlined_call_operand.vmem [shape: f32[72,512], index: 1, kind: input, shape index: {}]   ;;  %s601_s2 = inlined_call_operand.vmem [shape: f32[8,1], index: 2, kind: input, shape index: {}]   ;;  %s602_s3 = inlined_call_operand.vmem [shape: f32[8,512], index: 3, kind: output, shape index: {}]  }
   0x1   :  { %s505_s14 = smov 0  }
   0x2 LB: > { %s397_s15 = sadd.s32 4294967295, %s477_s14   ;;  %s518_s16 = sadd.s32 1, %s477_s14   ;;  %s477_s14 = sphi %s505_s14, %s605_s14   ;;  %s473_s13 = sphi %s503_s13, %s604_s13   ;;  %s469_s12 = sphi %s501_s12, %s603_s12  }
   0x3   : > { %s38_s17 = ssub.s32 %s477_s14, %s518_s16  ;;  %s41_s18 = sadd.s32 1, %s473_s13 }
   0x4   : > { %p39_p0 = scmp.eq.s32.totalorder %s38_s17, 0  ;;  %p48_p1 = scmp.ne.s32.totalorder %s473_s13, %s469_s12 }
   0x5   : > { %p49_p2 = scmp.eq.s32.totalorder %s477_s14, 0  ;;  %p400_p4 = scmp.ge.s32.totalorder %s477_s14, 2 }
   0x6   : > { %s527_s19 = scalar_select %p39_p0, %s473_s13, %s41_s18  }
   0x7   : > { %p50_p3 = por %p49_p2, %p48_p1  ;;  %127 = sbr.rel (%p400_p4) target bundleno = 27 (0x1b), region = 24 }
   0xe   : > { %130 = sbr.rel (!%p50_p3) target bundleno = 27 (0x1b), region = 28  ;;  %s132_s20 = sand.u32 (%p50_p3), 1, %s473_s13  }
   0xf   : > { %s409_s21 = sshll.u32 (%p50_p3), %s477_s14, 4  ;;  %s426_s22 = smul.u32 (%p50_p3), 144, %s132_s20 }
  0x10   : > { %s535_s25 = scalar_lea.vmem (%p50_p3), %s600_s1, %s409_s21 }
  0x11   : > { %v150_v0 = vld [vmem:[%s535_s25] sm:$0xff] (%p50_p3)  ;;  %v152_v1 = vld [vmem:[%s535_s25 + $0x8] sm:$0xff] (%p50_p3)  ;;  %s134_s26 = scalar_lea.vmem (%p50_p3), [#allocation2], %s426_s22 }
  0x12   : > { %v154_v2 = vld [vmem:[%s535_s25 + $0x20] sm:$0xff] (%p50_p3)  ;;  %v156_v3 = vld [vmem:[%s535_s25 + $0x28] sm:$0xff] (%p50_p3)  ;;  %151 = vst [vmem:[%s134_s26] sm:$0xff] (%p50_p3), %v150_v0  ;;  %153 = vst [vmem:[%s134_s26 + $0x8] sm:$0xff] (%p50_p3), %v152_v1 }
  0x13   : > { %v158_v4 = vld [vmem:[%s535_s25 + $0x40] sm:$0xff] (%p50_p3)  ;;  %v160_v5 = vld [vmem:[%s535_s25 + $0x48] sm:$0xff] (%p50_p3)  ;;  %155 = vst [vmem:[%s134_s26 + $0x10] sm:$0xff] (%p50_p3), %v154_v2  ;;  %157 = vst [vmem:[%s134_s26 + $0x18] sm:$0xff] (%p50_p3), %v156_v3 }
  0x14   : > { %159 = vst [vmem:[%s134_s26 + $0x20] sm:$0xff] (%p50_p3), %v158_v4  ;;  %161 = vst [vmem:[%s134_s26 + $0x28] sm:$0xff] (%p50_p3), %v160_v5  ;;  %v162_v6 = vld [vmem:[%s535_s25 + $0x60] sm:$0xff] (%p50_p3)  ;;  %v164_v7 = vld [vmem:[%s535_s25 + $0x68] sm:$0xff] (%p50_p3) }
  0x15   : > { %v166_v8 = vld [vmem:[%s535_s25 + $0x80] sm:$0xff]  ;;  %163 = vst [vmem:[%s134_s26 + $0x30] sm:$0xff] %v162_v6  ;;  %165 = vst [vmem:[%s134_s26 + $0x38] sm:$0xff] %v164_v7  ;;  %v168_v9 = vld [vmem:[%s535_s25 + $0x88] sm:$0xff] }
  0x16   : > { %167 = vst [vmem:[%s134_s26 + $0x40] sm:$0xff] %v166_v8  ;;  %v170_v10 = vld [vmem:[%s535_s25 + $0xa0] sm:$0xff]  ;;  %v172_v11 = vld [vmem:[%s535_s25 + $0xa8] sm:$0xff]  ;;  %169 = vst [vmem:[%s134_s26 + $0x48] sm:$0xff] %v168_v9 }
  0x17   : > { %171 = vst [vmem:[%s134_s26 + $0x50] sm:$0xff] %v170_v10  ;;  %173 = vst [vmem:[%s134_s26 + $0x58] sm:$0xff] %v172_v11  ;;  %v174_v12 = vld [vmem:[%s535_s25 + $0xc0] sm:$0xff]  ;;  %v176_v13 = vld [vmem:[%s535_s25 + $0xc8] sm:$0xff] }
  0x18   : > { %v178_v14 = vld [vmem:[%s535_s25 + $0xe0] sm:$0xff]  ;;  %175 = vst [vmem:[%s134_s26 + $0x60] sm:$0xff] %v174_v12  ;;  %177 = vst [vmem:[%s134_s26 + $0x68] sm:$0xff] %v176_v13  ;;  %v180_v15 = vld [vmem:[%s535_s25 + $0xe8] sm:$0xff] }
  0x19   : > { %179 = vst [vmem:[%s134_s26 + $0x70] sm:$0xff] %v178_v14  ;;  %v182_v16 = vld [vmem:[%s535_s25 + $0x100] sm:$0xff]  ;;  %v184_v17 = vld [vmem:[%s535_s25 + $0x108] sm:$0xff]  ;;  %181 = vst [vmem:[%s134_s26 + $0x78] sm:$0xff] %v180_v15 }
  0x1a   : > { %183 = vst [vmem:[%s134_s26 + $0x80] sm:$0xff] %v182_v16  ;;  %185 = vst [vmem:[%s134_s26 + $0x88] sm:$0xff] %v184_v17 }
  0x1b PF: > { %p403_p5 = scmp.ge.s32.totalorder %s477_s14, 1  ;;  %p190_p6 = scmp.lt.s32.totalorder %s477_s14, 3 }
  0x1d   : > { %p191_p7 = pnand %p403_p5, %p190_p6 }
  0x1e   : > { %s197_s27 = sand.u32 (!%p191_p7), 1, %s469_s12   ;;  %v246_v18 = vld [vmem:[%s601_s2] sm:$0xff] (!%p191_p7)  ;;  %v479_v19 = vmov (!%p191_p7), 0.0   ;;  %v480_v20 = vmov (!%p191_p7), 0   ;;  %vm252_vm0 = vcmask (!%p191_p7), 588800   ;;  %s404_s7 = sshll.u32 (!%p191_p7), %s397_s15, 1 }
  0x1f   : > { %194 = sbr.rel (%p191_p7) target bundleno = 275 (0x113), region = 51  ;;  %320 = vmatprep.mubr.f32.mxu0 (!%p191_p7), %v479_v19  ;;  %454 = vset.pattern.permute.xlu0 (!%p191_p7), %v480_v20  ;;  %v227_v47 = vld [vmem:[%s599_s0] sm:$0xff] (!%p191_p7)  ;;  %p222_p8 = scmp.lt.s32.totalorder (!%p191_p7), %s404_s7, 3 }
  0x20   : > { %s427_s30 = smul.u32 (!%p191_p7), 144, %s197_s27  ;;  %249 = vperm.xlu0 (!%p191_p7), %454, %v246_v18  }
  0x22   : > { %s561_s4 = scalar_lea.vmem (!%p191_p7), [#allocation2], %s427_s30 }
  0x23   : > { %v229_v21 = vld [vmem:[%s561_s4 + $0x8] sm:$0xff] (!%p191_p7)  ;;  %v231_v22 = vld [vmem:[%s561_s4 + $0x18] sm:$0xff] (!%p191_p7)  ;;  %v228_v23 = vld [vmem:[%s561_s4] sm:$0xff] (!%p191_p7) }
  0x24   : > { %v410_v24 = vpack.c.bf16 (!%p191_p7), %v231_v22, %v229_v21  ;;  %v230_v25 = vld [vmem:[%s561_s4 + $0x10] sm:$0xff] (!%p191_p7)  ;;  %v233_v26 = vld [vmem:[%s561_s4 + $0x28] sm:$0xff] (!%p191_p7)  ;;  %v235_v27 = vld [vmem:[%s561_s4 + $0x38] sm:$0xff] (!%p191_p7) }
  0x25   : > { %v412_v28 = vpack.c.bf16 (!%p191_p7), %v230_v25, %v228_v23  ;;  %v414_v29 = vpack.c.bf16 (!%p191_p7), %v235_v27, %v233_v26  ;;  %v232_v30 = vld [vmem:[%s561_s4 + $0x20] sm:$0xff] (!%p191_p7)  ;;  %v234_v31 = vld [vmem:[%s561_s4 + $0x30] sm:$0xff] (!%p191_p7)  ;;  %v237_v32 = vld [vmem:[%s561_s4 + $0x48] sm:$0xff] (!%p191_p7) }
  0x26   : > { %411 = vmatprep.subr.bf16.mxu0 %v410_v24  ;;  %v239_v33 = vld [vmem:[%s561_s4 + $0x58] sm:$0xff]  ;;  %v416_v34 = vpack.c.bf16 %v234_v31, %v232_v30  ;;  %v236_v36 = vld [vmem:[%s561_s4 + $0x40] sm:$0xff]  ;;  %v238_v37 = vld [vmem:[%s561_s4 + $0x50] sm:$0xff]  ;;  %s607_s7 = smov (!%p222_p8, %s404_s7), 3 }
  0x27   : > { %413 = vmatpush1.bf16.msra.mxu0 %v412_v28  ;;  %v418_v35 = vpack.c.bf16 %v239_v33, %v237_v32  ;;  %v241_v38 = vld [vmem:[%s561_s4 + $0x68] sm:$0xff]  ;;  %v243_v39 = vld [vmem:[%s561_s4 + $0x78] sm:$0xff]  ;;  %v420_v40 = vpack.c.bf16 %v238_v37, %v236_v36  ;;  %v240_v42 = vld [vmem:[%s561_s4 + $0x60] sm:$0xff]  ;;  %s405_s8 = sshll.u32 %s607_s7, 3 }
  0x28   : > { %415 = vmatprep.subr.bf16.mxu0 %v414_v29  ;;  %v422_v41 = vpack.c.bf16 %v243_v39, %v241_v38  ;;  %v242_v43 = vld [vmem:[%s561_s4 + $0x70] sm:$0xff]  ;;  %v245_v45 = vld [vmem:[%s561_s4 + $0x88] sm:$0xff]  ;;  %v244_v46 = vld [vmem:[%s561_s4 + $0x80] sm:$0xff]  ;;  %s225_s11 = scalar_lea.vmem %s602_s3, %s405_s8 }
  0x29   : > { %v424_v44 = vpack.c.bf16 %v242_v43, %v240_v42 }
  0x2b   : > { %417 = vmatpush1.bf16.msra.mxu0 %v416_v34 }
  0x2c   : > { %419 = vmatprep.subr.bf16.mxu0 %v418_v35 }
  0x2f   : > { %421 = vmatpush1.bf16.msra.mxu0 %v420_v40 }
  0x30   : > { %423 = vmatprep.subr.bf16.mxu0 %v422_v41 }
  0x33   : > { %425 = vmatpush1.bf16.msra.mxu0 %v424_v44 }
  0x34   : > { %272 = vmatprep.subr.mxu0 %v245_v45 }
  0x37   : > { %273 = vmatpush1.msra.mxu0 %v244_v46 }
  0x38   : > { %406 = vmatmul.mubr.msk.f32.vlgmr.msra.gmra.mrb[0].mxu0 %vm252_vm0, %v227_v47 }
  0x9f   : > { %v250_v48 = vpop.permute.xlu0 %249 }
 0x10b   : > { %v322_v49 = vpop.f32.mrb[0].mxu0 }
 0x10c   : > { %v323_v50 = vadd.f32 %v322_v49, %v250_v48  ;;  %v324_v51 = vpop.f32.mrb[1].mxu0 }
 0x10d   : > { %v325_v52 = vadd.f32 %v324_v51, %v250_v48 }
 0x10e   : > { %vm327_vm1 = vcmp.ge.f32.partialorder %v323_v50, 0.0  ;;  %v329_v53 = vmul.f32 0.01, %v323_v50 }
 0x10f   : > { %vm328_vm2 = vcmp.ge.f32.partialorder %v325_v52, 0.0  ;;  %v330_v54 = vmul.f32 0.01, %v325_v52 }
 0x110   : > { %v331_v55 = vsel %vm327_vm1, %v323_v50, %v329_v53 }
 0x111   : > { %333 = vst [vmem:[%s225_s11] sm:$0xff] %v331_v55  ;;  %v332_v56 = vsel %vm328_vm2, %v325_v52, %v330_v54 }
 0x112   : > { %334 = vst [vmem:[%s225_s11 + $0x8] sm:$0xff] %v332_v56 }
 0x113 PF: > { %p10_p9 = scmp.ge.s32.totalorder %s518_s16, 4   ;;  %s603_s12 = smov %s473_s13 }
 0x114   : > { %s604_s13 = smov %s527_s19  ;;  %s605_s14 = smov %s518_s16 }
 0x115   :  { %12 = sbr.rel (!%p10_p9) target bundleno = 2 (0x2), region = 90 }

// kernel: _forward_impl.47
= control target key start
LH: loop header
LB: loop body
LE: loop exit
PB: predicated region body
PF: predicated region fallthrough
CT: control target
= control target key end

     0   :  { %vm42_vm0 = vcmask 64512   ;;  %v361_v0 = vmov 0.0   ;;  %vm362_vm1 = vmmov 0   ;;  %v363_v4 = vmov 0.0|0.0   ;;  %s475_s1 = inlined_call_operand.vmem [shape: f32[8,32], index: 1, kind: input, shape index: {}]   ;;  %s476_s7 = inlined_call_operand.vmem [shape: f32[8,8], index: 7, kind: input, shape index: {}]   ;;  %s477_s2 = inlined_call_operand.vmem [shape: f32[32,128], index: 2, kind: input, shape index: {}]   ;;  %s478_s0 = inlined_call_operand.vmem [shape: f32[8,128], index: 0, kind: input, shape index: {}]   ;;  %s479_s6 = inlined_call_operand.vmem [shape: f32[8,8], index: 6, kind: input, shape index: {}]   ;;  %s480_s8 = inlined_call_operand.vmem [shape: f32[8,1], index: 8, kind: input, shape index: {}]   ;;  %s481_s9 = inlined_call_operand.vmem [shape: f32[8,1], index: 9, kind: input, shape index: {}]   ;;  %s482_s10 = inlined_call_operand.vmem [shape: f32[8,1], index: 10, kind: input, shape index: {}]   ;;  %s483_s3 = inlined_call_operand.vmem [shape: f32[1,128], index: 3, kind: input, shape index: {}]   ;;  %s484_s4 = inlined_call_operand.vmem [shape: f32[1,128], index: 4, kind: input, shape index: {}]   ;;  %s485_s5 = inlined_call_operand.vmem [shape: f32[8,128], index: 5, kind: input, shape index: {}]   ;;  %s486_s11 = inlined_call_operand.vmem [shape: f32[8,128], index: 11, kind: output, shape index: {}]  }
   0x1   :  { %326 = vmatprep.subr.mxu0 %v361_v0  ;;  %v41_v1 = vld [vmem:[%s475_s1] sm:$0xff]  ;;  %328 = vmatprep.mubr.msk.f32.mxu0 %vm362_vm1, %v361_v0  ;;  %v117_v5 = vld [vmem:[%s477_s2 + $0x8] sm:$0xff]  ;;  %v118_v7 = vld [vmem:[%s477_s2 + $0x10] sm:$0xff]  ;;  %v364_v12 = vmov 0   ;;  %vm120_vm2 = vcmask 261120  }
   0x2   :  { %v40_v2 = vld [vmem:[%s476_s7] sm:$0xff]  ;;  %327 = vmatpush3.msra.mxu0 %v41_v1  ;;  %347 = vmatprep.subr.bf16.mxu1 %v363_v4  ;;  %v119_v9 = vld [vmem:[%s477_s2 + $0x18] sm:$0xff] }
   0x3   :  { %v116_v3 = vld [vmem:[%s477_s2] sm:$0xff]  ;;  %329 = vmatmul.mubr.msk.f32.vlgmr.msra.gmra.mrb[0].mxu0 %vm42_vm0, %v40_v2  ;;  %342 = vmatprep.subr.mxu0 %v361_v0  ;;  %v351_v10 = vpack.c.bf16 %v119_v9, %v118_v7 }
   0x4   :  { %v39_v6 = vld [vmem:[%s478_s0] sm:$0xff]  ;;  %v348_v8 = vpack.c.bf16 %v117_v5, %v116_v3  ;;  %344 = vmatprep.mubr.msk.f32.mxu0 %vm362_vm1, %v361_v0  ;;  %339 = vmatprep.mubr.msk.f32.mxu1 %vm362_vm1, %v361_v0 }
   0x5   :  { %343 = vmatpush3.msra.mxu0 %v39_v6  ;;  %v38_v11 = vld [vmem:[%s479_s6] sm:$0xff]  ;;  %357 = vset.pattern.permute.xlu0 %v364_v12 }
   0x6   :  { %349 = vmatpush3.bf16.msra.mxu1 %v348_v8  ;;  %v267_v13 = vld [vmem:[%s480_s8] sm:$0xff]  ;;  %358 = vset.pattern.permute.xlu1 %v364_v12 }
   0x7   :  { %350 = vmatprep.subr.bf16.mxu1 %v363_v4  ;;  %345 = vmatmul.mubr.msk.f32.vlgmr.msra.gmra.mrb[2].mxu0 %vm42_vm0, %v38_v11  ;;  %v297_v14 = vld [vmem:[%s482_s10] sm:$0xff] }
   0x8   :  { %271 = vperm.xlu0 %357, %v267_v13   ;;  %300 = vperm.xlu1 %358, %v297_v14   ;;  %v282_v15 = vld [vmem:[%s481_s9] sm:$0xff] }
   0x9   :  { %v315_v21 = vld [vmem:[%s483_s3] ss:$0 sm:$0xff] }
   0xa   :  { %352 = vmatpush3.bf16.msra.mxu1 %v351_v10  ;;  %v316_v23 = vld [vmem:[%s484_s4] ss:$0 sm:$0xff] }
   0xb   :  { %v304_v33 = vld [vmem:[%s485_s5] sm:$0xff] }
   0xc   :  { %286 = vperm.xlu0 %357, %v282_v15  }
  0x87   :  { %v272_v20 = vpop.permute.xlu0 %271  ;;  %v301_v30 = vpop.permute.xlu1 %300 }
  0x88   :  { %v280_v25 = vmul.f32 %v315_v21, %v272_v20 }
  0x8b   :  { %v287_v22 = vpop.permute.xlu0 %286 }
  0x8c   :  { %v295_v28 = vmul.f32 %v316_v23, %v287_v22 }
  0xd6   :  { %v112_v16 = vpop.f32.mrb[0].mxu0 }
  0xd7   :  { %v330_v17 = vpop.f32.mrb[1].mxu0  ;;  %340 = vmatmul.mubr.msk.f32.vlgmr.msra.gmra.mrb[0].mxu1 %vm120_vm2, %v112_v16 }
  0xda   :  { %v263_v18 = vpop.f32.mrb[2].mxu0 }
  0xdb   :  { %v346_v19 = vpop.f32.mrb[3].mxu0 }
 0x1aa   :  { %v190_v24 = vpop.f32.mrb[0].mxu1 }
 0x1ab   :  { %v264_v26 = vadd.f32 %v263_v18, %v190_v24  ;;  %v341_v27 = vpop.f32.mrb[1].mxu1 }
 0x1ad   :  { %v281_v29 = vadd.f32 %v280_v25, %v264_v26 }
 0x1af   :  { %v296_v31 = vadd.f32 %v295_v28, %v281_v29 }
 0x1b1   :  { %v303_v32 = vadd.f32 %v301_v30, %v296_v31 }
 0x1b3   :  { %359 = vtanh.f32 %v303_v32 }
 0x1bd   :  { %v360_v34 = vpop.eup %359 }
 0x1be   :  { %v306_v35 = vadd.f32 %v360_v34, %v304_v33 }
 0x1c0   :  { %307 = vst [vmem:[%s486_s11] sm:$0xff] %v306_v35 }

// kernel: _forward_impl.48
= control target key start
LH: loop header
LB: loop body
LE: loop exit
PB: predicated region body
PF: predicated region fallthrough
CT: control target
= control target key end

     0   :  { %v161_v0 = vmov 0.0|0.0   ;;  %vm162_vm0 = vmmov 0   ;;  %v163_v4 = vmov 0.0   ;;  %v164_v7 = vmov 0   ;;  %s221_s1 = inlined_call_operand.vmem [shape: f32[72,128], index: 1, kind: input, shape index: {}]   ;;  %s222_s2 = inlined_call_operand.vmem [shape: f32[8,1], index: 2, kind: input, shape index: {}]   ;;  %s223_s0 = inlined_call_operand.vmem [shape: f32[8,72], index: 0, kind: input, shape index: {}]   ;;  %s224_s3 = inlined_call_operand.vmem [shape: f32[8,128], index: 3, kind: output, shape index: {}]  }
   0x1   :  { %144 = vmatprep.subr.bf16.mxu0 %v161_v0  ;;  %v15_v1 = vld [vmem:[%s221_s1] sm:$0xff]  ;;  %v16_v2 = vld [vmem:[%s221_s1 + $0x8] sm:$0xff]  ;;  %v17_v3 = vld [vmem:[%s221_s1 + $0x10] sm:$0xff]  ;;  %141 = vmatprep.mubr.msk.f32.mxu0 %vm162_vm0, %v163_v4  ;;  %vm30_vm1 = vcmask 588800  }
   0x2   :  { %v145_v5 = vpack.c.bf16 %v16_v2, %v15_v1  ;;  %v18_v6 = vld [vmem:[%s221_s1 + $0x18] sm:$0xff]  ;;  %160 = vset.pattern.permute.xlu0 %v164_v7  ;;  %v24_v9 = vld [vmem:[%s222_s2] sm:$0xff]  ;;  %v20_v11 = vld [vmem:[%s221_s1 + $0x28] sm:$0xff] }
   0x3   :  { %v148_v8 = vpack.c.bf16 %v18_v6, %v17_v3  ;;  %v19_v10 = vld [vmem:[%s221_s1 + $0x20] sm:$0xff]  ;;  %27 = vperm.xlu0 %160, %v24_v9   ;;  %v21_v13 = vld [vmem:[%s221_s1 + $0x30] sm:$0xff]  ;;  %v22_v14 = vld [vmem:[%s221_s1 + $0x38] sm:$0xff] }
   0x4   :  { %146 = vmatpush3.bf16.msra.mxu0 %v145_v5  ;;  %v151_v12 = vpack.c.bf16 %v20_v11, %v19_v10  ;;  %v154_v15 = vpack.c.bf16 %v22_v14, %v21_v13  ;;  %v23_v16 = vld [vmem:[%s221_s1 + $0x40] sm:$0xff] }
   0x5   :  { %147 = vmatprep.subr.bf16.mxu0 %v161_v0  ;;  %v14_v17 = vld [vmem:[%s223_s0] sm:$0xff] }
   0x8   :  { %149 = vmatpush3.bf16.msra.mxu0 %v148_v8 }
   0x9   :  { %150 = vmatprep.subr.bf16.mxu0 %v161_v0 }
   0xc   :  { %152 = vmatpush3.bf16.msra.mxu0 %v151_v12 }
   0xd   :  { %153 = vmatprep.subr.bf16.mxu0 %v161_v0 }
  0x10   :  { %155 = vmatpush3.bf16.msra.mxu0 %v154_v15 }
  0x11   :  { %139 = vmatprep.subr.mxu0 %v163_v4 }
  0x14   :  { %140 = vmatpush3.msra.mxu0 %v23_v16 }
  0x15   :  { %142 = vmatmul.mubr.msk.f32.vlgmr.msra.gmra.mrb[0].mxu0 %vm30_vm1, %v14_v17 }
  0x82   :  { %v28_v18 = vpop.permute.xlu0 %27 }
  0xe8   :  { %v100_v19 = vpop.f32.mrb[0].mxu0 }
  0xe9   :  { %v101_v20 = vadd.f32 %v100_v19, %v28_v18  ;;  %v143_v21 = vpop.f32.mrb[1].mxu0 }
  0xeb   :  { %vm104_vm2 = vcmp.ge.f32.partialorder %v101_v20, 0.0  ;;  %v105_v22 = vmul.f32 0.01, %v101_v20 }
  0xed   :  { %v106_v23 = vsel %vm104_vm2, %v101_v20, %v105_v22 }
  0xee   :  { %107 = vst [vmem:[%s224_s3] sm:$0xff] %v106_v23 }

// kernel: _forward_impl.50
= control target key start
LH: loop header
LB: loop body
LE: loop exit
PB: predicated region body
PF: predicated region fallthrough
CT: control target
= control target key end

     0   :  { %v162_v0 = vmov 0.0|0.0   ;;  %vm163_vm0 = vmmov 0   ;;  %v164_v4 = vmov 0.0   ;;  %v165_v7 = vmov 0   ;;  %s222_s1 = inlined_call_operand.vmem [shape: f32[72,8], index: 1, kind: input, shape index: {}]   ;;  %s223_s2 = inlined_call_operand.vmem [shape: f32[8,1], index: 2, kind: input, shape index: {}]   ;;  %s224_s0 = inlined_call_operand.vmem [shape: f32[8,72], index: 0, kind: input, shape index: {}]   ;;  %s225_s3 = inlined_call_operand.vmem [shape: f32[8,8], index: 3, kind: output, shape index: {}]  }
   0x1   :  { %145 = vmatprep.subr.bf16.mxu0 %v162_v0  ;;  %v15_v1 = vld [vmem:[%s222_s1] sm:$0xff]  ;;  %v16_v2 = vld [vmem:[%s222_s1 + $0x8] sm:$0xff]  ;;  %v17_v3 = vld [vmem:[%s222_s1 + $0x10] sm:$0xff]  ;;  %142 = vmatprep.mubr.msk.f32.mxu0 %vm163_vm0, %v164_v4  ;;  %vm30_vm1 = vcmask 588800   ;;  %vm107_vm3 = vcmask 64512  }
   0x2   :  { %v146_v5 = vpack.c.bf16 %v16_v2, %v15_v1  ;;  %v18_v6 = vld [vmem:[%s222_s1 + $0x18] sm:$0xff]  ;;  %161 = vset.pattern.permute.xlu0 %v165_v7  ;;  %v24_v9 = vld [vmem:[%s223_s2] sm:$0xff]  ;;  %v20_v11 = vld [vmem:[%s222_s1 + $0x28] sm:$0xff] }
   0x3   :  { %v149_v8 = vpack.c.bf16 %v18_v6, %v17_v3  ;;  %v19_v10 = vld [vmem:[%s222_s1 + $0x20] sm:$0xff]  ;;  %27 = vperm.xlu0 %161, %v24_v9   ;;  %v21_v13 = vld [vmem:[%s222_s1 + $0x30] sm:$0xff]  ;;  %v22_v14 = vld [vmem:[%s222_s1 + $0x38] sm:$0xff] }
   0x4   :  { %147 = vmatpush3.bf16.msra.mxu0 %v146_v5  ;;  %v152_v12 = vpack.c.bf16 %v20_v11, %v19_v10  ;;  %v155_v15 = vpack.c.bf16 %v22_v14, %v21_v13  ;;  %v23_v16 = vld [vmem:[%s222_s1 + $0x40] sm:$0xff] }
   0x5   :  { %148 = vmatprep.subr.bf16.mxu0 %v162_v0  ;;  %v14_v17 = vld [vmem:[%s224_s0] sm:$0xff] }
   0x8   :  { %150 = vmatpush3.bf16.msra.mxu0 %v149_v8 }
   0x9   :  { %151 = vmatprep.subr.bf16.mxu0 %v162_v0 }
   0xc   :  { %153 = vmatpush3.bf16.msra.mxu0 %v152_v12 }
   0xd   :  { %154 = vmatprep.subr.bf16.mxu0 %v162_v0 }
  0x10   :  { %156 = vmatpush3.bf16.msra.mxu0 %v155_v15 }
  0x11   :  { %140 = vmatprep.subr.mxu0 %v164_v4 }
  0x14   :  { %141 = vmatpush3.msra.mxu0 %v23_v16 }
  0x15   :  { %143 = vmatmul.mubr.msk.f32.vlgmr.msra.gmra.mrb[0].mxu0 %vm30_vm1, %v14_v17 }
  0x82   :  { %v28_v18 = vpop.permute.xlu0 %27 }
  0xe8   :  { %v100_v19 = vpop.f32.mrb[0].mxu0 }
  0xe9   :  { %v101_v20 = vadd.f32 %v100_v19, %v28_v18  ;;  %v144_v21 = vpop.f32.mrb[1].mxu0 }
  0xeb   :  { %vm104_vm2 = vcmp.ge.f32.partialorder %v101_v20, 0.0  ;;  %v105_v22 = vmul.f32 0.01, %v101_v20 }
  0xed   :  { %v106_v23 = vsel %vm104_vm2, %v101_v20, %v105_v22 }
  0xee   :  { %108 = vst.msk [vmem:[%s225_s3] sm:$0xff] %vm107_vm3, %v106_v23 }

// kernel: _forward_impl.49
= control target key start
LH: loop header
LB: loop body
LE: loop exit
PB: predicated region body
PF: predicated region fallthrough
CT: control target
= control target key end

     0   :  { %vm42_vm0 = vcmask 64512   ;;  %v348_v0 = vmov 0.0   ;;  %vm349_vm1 = vmmov 0   ;;  %vm121_vm2 = vcmask 1041408   ;;  %s449_s1 = inlined_call_operand.vmem [shape: f32[8,2], index: 1, kind: input, shape index: {}]   ;;  %s450_s7 = inlined_call_operand.vmem [shape: f32[8,8], index: 7, kind: input, shape index: {}]   ;;  %s451_s0 = inlined_call_operand.vmem [shape: f32[8,32], index: 0, kind: input, shape index: {}]   ;;  %s452_s2 = inlined_call_operand.vmem [shape: f32[2,32], index: 2, kind: input, shape index: {}]   ;;  %s453_s6 = inlined_call_operand.vmem [shape: f32[8,8], index: 6, kind: input, shape index: {}]   ;;  %s454_s8 = inlined_call_operand.vmem [shape: f32[8,1], index: 8, kind: input, shape index: {}]   ;;  %s455_s9 = inlined_call_operand.vmem [shape: f32[8,1], index: 9, kind: input, shape index: {}]   ;;  %s456_s10 = inlined_call_operand.vmem [shape: f32[8,1], index: 10, kind: input, shape index: {}]   ;;  %s457_s3 = inlined_call_operand.vmem [shape: f32[1,32], index: 3, kind: input, shape index: {}]   ;;  %s458_s4 = inlined_call_operand.vmem [shape: f32[1,32], index: 4, kind: input, shape index: {}]   ;;  %s459_s5 = inlined_call_operand.vmem [shape: f32[8,32], index: 5, kind: input, shape index: {}]   ;;  %s460_s11 = inlined_call_operand.vmem [shape: f32[8,32], index: 11, kind: output, shape index: {}]  }
   0x1   :  { %326 = vmatprep.subr.mxu0 %v348_v0  ;;  %v41_v1 = vld [vmem:[%s449_s1] sm:$0xff]  ;;  %328 = vmatprep.mubr.msk.f32.mxu0 %vm349_vm1, %v348_v0  ;;  %v350_v6 = vmov 0   ;;  %vm117_vm3 = vcmask 15360   ;;  %vm308_vm4 = vcmask 261120  }
   0x2   :  { %v40_v2 = vld [vmem:[%s450_s7] sm:$0xff]  ;;  %327 = vmatpush3.msra.mxu0 %v41_v1  ;;  %331 = vmatprep.subr.mxu1 %v348_v0 }
   0x3   :  { %v39_v3 = vld [vmem:[%s451_s0] sm:$0xff]  ;;  %329 = vmatmul.mubr.msk.f32.vlgmr.msra.gmra.mrb[0].mxu0 %vm42_vm0, %v40_v2  ;;  %336 = vmatprep.subr.mxu0 %v348_v0 }
   0x4   :  { %337 = vmatpush3.msra.mxu0 %v39_v3  ;;  %338 = vmatprep.mubr.msk.f32.mxu0 %vm349_vm1, %v348_v0  ;;  %v116_v4 = vld [vmem:[%s452_s2] sm:$0x3] }
   0x5   :  { %333 = vmatprep.mubr.msk.f32.mxu1 %vm349_vm1, %v348_v0  ;;  %v38_v5 = vld [vmem:[%s453_s6] sm:$0xff]  ;;  %332 = vmatpush3.msk.msra.mxu1 %vm121_vm2, %v116_v4 }
   0x6   :  { %344 = vset.pattern.permute.xlu0 %v350_v6  ;;  %v268_v7 = vld [vmem:[%s454_s8] sm:$0xff]  ;;  %345 = vset.pattern.permute.xlu1 %v350_v6 }
   0x7   :  { %339 = vmatmul.mubr.msk.f32.vlgmr.msra.gmra.mrb[2].mxu0 %vm42_vm0, %v38_v5  ;;  %v298_v8 = vld [vmem:[%s456_s10] sm:$0xff]  ;;  %272 = vperm.xlu0 %344, %v268_v7  }
   0x8   :  { %301 = vperm.xlu1 %345, %v298_v8   ;;  %v283_v9 = vld [vmem:[%s455_s9] sm:$0xff] }
   0x9   :  { %v318_v15 = vld [vmem:[%s457_s3] ss:$0 sm:$0xff] }
   0xa   :  { %v319_v17 = vld [vmem:[%s458_s4] ss:$0 sm:$0xff] }
   0xb   :  { %287 = vperm.xlu0 %344, %v283_v9   ;;  %v305_v27 = vld [vmem:[%s459_s5] sm:$0xff] }
  0x86   :  { %v273_v14 = vpop.permute.xlu0 %272 }
  0x87   :  { %v281_v19 = vmul.f32 %v318_v15, %v273_v14  ;;  %v302_v24 = vpop.permute.xlu1 %301 }
  0x8a   :  { %v288_v16 = vpop.permute.xlu0 %287 }
  0x8b   :  { %v296_v22 = vmul.f32 %v319_v17, %v288_v16 }
  0xd6   :  { %v112_v10 = vpop.f32.mrb[0].mxu0 }
  0xd7   :  { %v330_v11 = vpop.f32.mrb[1].mxu0  ;;  %334 = vmatmul.mubr.msk.f32.vlgmr.msra.gmra.mrb[0].mxu1 %vm117_vm3, %v112_v10 }
  0xda   :  { %v264_v12 = vpop.f32.mrb[2].mxu0 }
  0xdb   :  { %v340_v13 = vpop.f32.mrb[3].mxu0 }
 0x1aa   :  { %v191_v18 = vpop.f32.mrb[0].mxu1 }
 0x1ab   :  { %v265_v20 = vadd.f32 %v264_v12, %v191_v18  ;;  %v335_v21 = vpop.f32.mrb[1].mxu1 }
 0x1ad   :  { %v282_v23 = vadd.f32 %v281_v19, %v265_v20 }
 0x1af   :  { %v297_v25 = vadd.f32 %v296_v22, %v282_v23 }
 0x1b1   :  { %v304_v26 = vadd.f32 %v302_v24, %v297_v25 }
 0x1b3   :  { %346 = vtanh.f32 %v304_v26 }
 0x1bd   :  { %v347_v28 = vpop.eup %346 }
 0x1be   :  { %v307_v29 = vadd.f32 %v347_v28, %v305_v27 }
 0x1c0   :  { %309 = vst.msk [vmem:[%s460_s11] sm:$0xff] %vm308_vm4, %v307_v29 }

// kernel: _forward_impl.51
= control target key start
LH: loop header
LB: loop body
LE: loop exit
PB: predicated region body
PF: predicated region fallthrough
CT: control target
= control target key end

     0   :  { %v257_v0 = vmov 0.0   ;;  %vm39_vm0 = vcmask 64512   ;;  %vm258_vm1 = vmmov 0   ;;  %v259_v7 = vmov 0   ;;  %s348_s1 = inlined_call_operand.vmem [shape: f32[8,2], index: 1, kind: input, shape index: {}, may-alias: {1,4}]   ;;  %s349_s0 = inlined_call_operand.vmem [shape: f32[8,2], index: 0, kind: input, shape index: {}]   ;;  %s350_s6 = inlined_call_operand.vmem [shape: f32[8,8], index: 6, kind: input, shape index: {}]   ;;  %s351_s5 = inlined_call_operand.vmem [shape: f32[8,8], index: 5, kind: input, shape index: {}]   ;;  %s352_s7 = inlined_call_operand.vmem [shape: f32[8,1], index: 7, kind: input, shape index: {}]   ;;  %s353_s9 = inlined_call_operand.vmem [shape: f32[8,1], index: 9, kind: input, shape index: {}]   ;;  %s354_s8 = inlined_call_operand.vmem [shape: f32[8,1], index: 8, kind: input, shape index: {}]   ;;  %s355_s2 = inlined_call_operand.vmem [shape: f32[1,2], index: 2, kind: input, shape index: {}, may-alias: {2,3}]   ;;  %s356_s3 = inlined_call_operand.vmem [shape: f32[1,2], index: 3, kind: input, shape index: {}, may-alias: {2,3}]   ;;  %s357_s4 = inlined_call_operand.vmem [shape: f32[8,2], index: 4, kind: input, shape index: {}, may-alias: {1,4}]   ;;  %s358_s10 = inlined_call_operand.vmem [shape: f32[8,2], index: 10, kind: output, shape index: {}]  }
   0x1   :  { %240 = vmatprep.subr.mxu0 %v257_v0  ;;  %245 = vmatprep.subr.mxu1 %v257_v0  ;;  %v38_v1 = vld [vmem:[%s348_s1] sm:$0xff]  ;;  %vm226_vm2 = vcmask 15360  }
   0x2   :  { %v36_v2 = vld [vmem:[%s349_s0] sm:$0xff]  ;;  %241 = vmatpush3.msra.mxu0 %v38_v1  ;;  %242 = vmatprep.mubr.msk.f32.mxu0 %vm258_vm1, %v257_v0 }
   0x3   :  { %v37_v3 = vld [vmem:[%s350_s6] sm:$0xff]  ;;  %246 = vmatpush3.msra.mxu1 %v36_v2  ;;  %247 = vmatprep.mubr.msk.f32.mxu1 %vm258_vm1, %v257_v0 }
   0x4   :  { %v35_v4 = vld [vmem:[%s351_s5] sm:$0xff]  ;;  %243 = vmatmul.mubr.msk.f32.vlgmr.msra.gmra.mrb[0].mxu0 %vm39_vm0, %v37_v3  ;;  %253 = vset.pattern.permute.xlu0 %v259_v7 }
   0x5   :  { %v186_v5 = vld [vmem:[%s352_s7] sm:$0xff]  ;;  %248 = vmatmul.mubr.msk.f32.vlgmr.msra.gmra.mrb[0].mxu1 %vm39_vm0, %v35_v4  ;;  %254 = vset.pattern.permute.xlu1 %v259_v7 }
   0x6   :  { %v216_v6 = vld [vmem:[%s353_s9] sm:$0xff]  ;;  %190 = vperm.xlu0 %253, %v186_v5  }
   0x7   :  { %219 = vperm.xlu1 %254, %v216_v6   ;;  %v201_v8 = vld [vmem:[%s354_s8] sm:$0xff] }
   0x8   :  { %v234_v10 = vld [vmem:[%s355_s2] ss:$0 sm:$0xff] }
   0x9   :  { %v235_v12 = vld [vmem:[%s356_s3] ss:$0 sm:$0xff] }
   0xa   :  { %205 = vperm.xlu0 %253, %v201_v8   ;;  %v223_v24 = vld [vmem:[%s357_s4] sm:$0xff] }
  0x85   :  { %v191_v9 = vpop.permute.xlu0 %190 }
  0x86   :  { %v199_v15 = vmul.f32 %v234_v10, %v191_v9  ;;  %v220_v21 = vpop.permute.xlu1 %219 }
  0x89   :  { %v206_v11 = vpop.permute.xlu0 %205 }
  0x8a   :  { %v214_v19 = vmul.f32 %v235_v12, %v206_v11 }
  0xd7   :  { %v109_v13 = vpop.f32.mrb[0].mxu0 }
  0xd8   :  { %v182_v14 = vpop.f32.mrb[0].mxu1  ;;  %v244_v17 = vpop.f32.mrb[1].mxu0 }
  0xd9   :  { %v183_v16 = vadd.f32 %v182_v14, %v109_v13  ;;  %v249_v18 = vpop.f32.mrb[1].mxu1 }
  0xdb   :  { %v200_v20 = vadd.f32 %v199_v15, %v183_v16 }
  0xdd   :  { %v215_v22 = vadd.f32 %v214_v19, %v200_v20 }
  0xdf   :  { %v222_v23 = vadd.f32 %v220_v21, %v215_v22 }
  0xe1   :  { %255 = vtanh.f32 %v222_v23 }
  0xeb   :  { %v256_v25 = vpop.eup %255 }
  0xec   :  { %v225_v26 = vadd.f32 %v256_v25, %v223_v24 }
  0xee   :  { %227 = vst.msk [vmem:[%s358_s10] sm:$0xff] %vm226_vm2, %v225_v26 }

// kernel: _forward_impl.84
= control target key start
LH: loop header
LB: loop body
LE: loop exit
PB: predicated region body
PF: predicated region fallthrough
CT: control target
= control target key end

     0   :  { %s518_s12 = smov 0   ;;  %s520_s13 = smov 0   ;;  %s616_s0 = inlined_call_operand.vmem [shape: f32[3,72], index: 0, kind: input, shape index: {}]   ;;  %s617_s1 = inlined_call_operand.vmem [shape: f32[72,512], index: 1, kind: input, shape index: {}]   ;;  %s618_s2 = inlined_call_operand.vmem [shape: f32[3,1], index: 2, kind: input, shape index: {}]   ;;  %s619_s3 = inlined_call_operand.vmem [shape: f32[3,512], index: 3, kind: output, shape index: {}]  }
   0x1   :  { %s522_s14 = smov 0  }
   0x2 LB: > { %s406_s15 = sadd.s32 4294967295, %s494_s14   ;;  %s535_s16 = sadd.s32 1, %s494_s14   ;;  %s494_s14 = sphi %s522_s14, %s622_s14   ;;  %s490_s13 = sphi %s520_s13, %s621_s13   ;;  %s486_s12 = sphi %s518_s12, %s620_s12  }
   0x3   : > { %s38_s17 = ssub.s32 %s494_s14, %s535_s16  ;;  %s41_s18 = sadd.s32 1, %s490_s13 }
   0x4   : > { %p39_p0 = scmp.eq.s32.totalorder %s38_s17, 0  ;;  %p48_p1 = scmp.ne.s32.totalorder %s490_s13, %s486_s12 }
   0x5   : > { %p49_p2 = scmp.eq.s32.totalorder %s494_s14, 0  ;;  %p409_p4 = scmp.ge.s32.totalorder %s494_s14, 2 }
   0x6   : > { %s544_s19 = scalar_select %p39_p0, %s490_s13, %s41_s18  }
   0x7   : > { %p50_p3 = por %p49_p2, %p48_p1  ;;  %127 = sbr.rel (%p409_p4) target bundleno = 27 (0x1b), region = 24 }
   0xe   : > { %130 = sbr.rel (!%p50_p3) target bundleno = 27 (0x1b), region = 28  ;;  %s132_s20 = sand.u32 (%p50_p3), 1, %s490_s13  }
   0xf   : > { %s418_s21 = sshll.u32 (%p50_p3), %s494_s14, 4  ;;  %s435_s22 = smul.u32 (%p50_p3), 144, %s132_s20 }
  0x10   : > { %s552_s25 = scalar_lea.vmem (%p50_p3), %s617_s1, %s418_s21 }
  0x11   : > { %v150_v0 = vld [vmem:[%s552_s25] sm:$0xff] (%p50_p3)  ;;  %v152_v1 = vld [vmem:[%s552_s25 + $0x8] sm:$0xff] (%p50_p3)  ;;  %s134_s26 = scalar_lea.vmem (%p50_p3), [#allocation2], %s435_s22 }
  0x12   : > { %v154_v2 = vld [vmem:[%s552_s25 + $0x20] sm:$0xff] (%p50_p3)  ;;  %v156_v3 = vld [vmem:[%s552_s25 + $0x28] sm:$0xff] (%p50_p3)  ;;  %151 = vst [vmem:[%s134_s26] sm:$0xff] (%p50_p3), %v150_v0  ;;  %153 = vst [vmem:[%s134_s26 + $0x8] sm:$0xff] (%p50_p3), %v152_v1 }
  0x13   : > { %v158_v4 = vld [vmem:[%s552_s25 + $0x40] sm:$0xff] (%p50_p3)  ;;  %v160_v5 = vld [vmem:[%s552_s25 + $0x48] sm:$0xff] (%p50_p3)  ;;  %155 = vst [vmem:[%s134_s26 + $0x10] sm:$0xff] (%p50_p3), %v154_v2  ;;  %157 = vst [vmem:[%s134_s26 + $0x18] sm:$0xff] (%p50_p3), %v156_v3 }
  0x14   : > { %159 = vst [vmem:[%s134_s26 + $0x20] sm:$0xff] (%p50_p3), %v158_v4  ;;  %161 = vst [vmem:[%s134_s26 + $0x28] sm:$0xff] (%p50_p3), %v160_v5  ;;  %v162_v6 = vld [vmem:[%s552_s25 + $0x60] sm:$0xff] (%p50_p3)  ;;  %v164_v7 = vld [vmem:[%s552_s25 + $0x68] sm:$0xff] (%p50_p3) }
  0x15   : > { %v166_v8 = vld [vmem:[%s552_s25 + $0x80] sm:$0xff]  ;;  %163 = vst [vmem:[%s134_s26 + $0x30] sm:$0xff] %v162_v6  ;;  %165 = vst [vmem:[%s134_s26 + $0x38] sm:$0xff] %v164_v7  ;;  %v168_v9 = vld [vmem:[%s552_s25 + $0x88] sm:$0xff] }
  0x16   : > { %167 = vst [vmem:[%s134_s26 + $0x40] sm:$0xff] %v166_v8  ;;  %v170_v10 = vld [vmem:[%s552_s25 + $0xa0] sm:$0xff]  ;;  %v172_v11 = vld [vmem:[%s552_s25 + $0xa8] sm:$0xff]  ;;  %169 = vst [vmem:[%s134_s26 + $0x48] sm:$0xff] %v168_v9 }
  0x17   : > { %171 = vst [vmem:[%s134_s26 + $0x50] sm:$0xff] %v170_v10  ;;  %173 = vst [vmem:[%s134_s26 + $0x58] sm:$0xff] %v172_v11  ;;  %v174_v12 = vld [vmem:[%s552_s25 + $0xc0] sm:$0xff]  ;;  %v176_v13 = vld [vmem:[%s552_s25 + $0xc8] sm:$0xff] }
  0x18   : > { %v178_v14 = vld [vmem:[%s552_s25 + $0xe0] sm:$0xff]  ;;  %175 = vst [vmem:[%s134_s26 + $0x60] sm:$0xff] %v174_v12  ;;  %177 = vst [vmem:[%s134_s26 + $0x68] sm:$0xff] %v176_v13  ;;  %v180_v15 = vld [vmem:[%s552_s25 + $0xe8] sm:$0xff] }
  0x19   : > { %179 = vst [vmem:[%s134_s26 + $0x70] sm:$0xff] %v178_v14  ;;  %v182_v16 = vld [vmem:[%s552_s25 + $0x100] sm:$0xff]  ;;  %v184_v17 = vld [vmem:[%s552_s25 + $0x108] sm:$0xff]  ;;  %181 = vst [vmem:[%s134_s26 + $0x78] sm:$0xff] %v180_v15 }
  0x1a   : > { %183 = vst [vmem:[%s134_s26 + $0x80] sm:$0xff] %v182_v16  ;;  %185 = vst [vmem:[%s134_s26 + $0x88] sm:$0xff] %v184_v17 }
  0x1b PF: > { %p412_p5 = scmp.ge.s32.totalorder %s494_s14, 1  ;;  %p190_p6 = scmp.lt.s32.totalorder %s494_s14, 3 }
  0x1d   : > { %p191_p7 = pnand %p412_p5, %p190_p6 }
  0x1e   : > { %s197_s27 = sand.u32 (!%p191_p7), 1, %s486_s12   ;;  %v496_v18 = vmov (!%p191_p7), 0.0   ;;  %v497_v19 = vmov (!%p191_p7), 0   ;;  %v246_v20 = vld [vmem:[%s618_s2] sm:$0x7] (!%p191_p7)  ;;  %vm252_vm0 = vcmask (!%p191_p7), 588800  }
  0x1f   : > { %194 = sbr.rel (%p191_p7) target bundleno = 302 (0x12e), region = 51  ;;  %320 = vmatprep.mubr.f32.mxu0 (!%p191_p7), %v496_v18  ;;  %463 = vset.pattern.permute.xlu0 (!%p191_p7), %v497_v19  ;;  %v227_v47 = vld [vmem:[%s616_s0] sm:$0x7] (!%p191_p7)  ;;  %s413_s7 = sshll.u32 (!%p191_p7), %s406_s15, 1 }
  0x20   : > { %s436_s28 = smul.u32 (!%p191_p7), 144, %s197_s27  ;;  %249 = vperm.xlu0 (!%p191_p7), %463, %v246_v20   ;;  %p222_p8 = scmp.lt.s32.totalorder (!%p191_p7), %s413_s7, 3 }
  0x22   : > { %s578_s4 = scalar_lea.vmem (!%p191_p7), [#allocation2], %s436_s28 }
  0x23   : > { %v229_v21 = vld [vmem:[%s578_s4 + $0x8] sm:$0xff] (!%p191_p7)  ;;  %v231_v22 = vld [vmem:[%s578_s4 + $0x18] sm:$0xff] (!%p191_p7)  ;;  %v228_v23 = vld [vmem:[%s578_s4] sm:$0xff] (!%p191_p7) }
  0x24   : > { %v419_v24 = vpack.c.bf16 (!%p191_p7), %v231_v22, %v229_v21  ;;  %v230_v25 = vld [vmem:[%s578_s4 + $0x10] sm:$0xff] (!%p191_p7)  ;;  %v233_v26 = vld [vmem:[%s578_s4 + $0x28] sm:$0xff] (!%p191_p7)  ;;  %v235_v27 = vld [vmem:[%s578_s4 + $0x38] sm:$0xff] (!%p191_p7) }
  0x25   : > { %v421_v28 = vpack.c.bf16 (!%p191_p7), %v230_v25, %v228_v23  ;;  %v423_v29 = vpack.c.bf16 (!%p191_p7), %v235_v27, %v233_v26  ;;  %v232_v30 = vld [vmem:[%s578_s4 + $0x20] sm:$0xff] (!%p191_p7)  ;;  %v234_v31 = vld [vmem:[%s578_s4 + $0x30] sm:$0xff] (!%p191_p7)  ;;  %v237_v32 = vld [vmem:[%s578_s4 + $0x48] sm:$0xff] (!%p191_p7) }
  0x26   : > { %420 = vmatprep.subr.bf16.mxu0 %v419_v24  ;;  %v239_v33 = vld [vmem:[%s578_s4 + $0x58] sm:$0xff]  ;;  %v425_v34 = vpack.c.bf16 %v234_v31, %v232_v30  ;;  %v236_v36 = vld [vmem:[%s578_s4 + $0x40] sm:$0xff]  ;;  %v238_v37 = vld [vmem:[%s578_s4 + $0x50] sm:$0xff]  ;;  %s624_s7 = smov (!%p222_p8, %s413_s7), 3 }
  0x27   : > { %422 = vmatpush1.bf16.msra.mxu0 %v421_v28  ;;  %v427_v35 = vpack.c.bf16 %v239_v33, %v237_v32  ;;  %v241_v38 = vld [vmem:[%s578_s4 + $0x68] sm:$0xff]  ;;  %v243_v39 = vld [vmem:[%s578_s4 + $0x78] sm:$0xff]  ;;  %v429_v40 = vpack.c.bf16 %v238_v37, %v236_v36  ;;  %v240_v42 = vld [vmem:[%s578_s4 + $0x60] sm:$0xff]  ;;  %s414_s8 = sshll.u32 %s624_s7, 2 }
  0x28   : > { %424 = vmatprep.subr.bf16.mxu0 %v423_v29  ;;  %v431_v41 = vpack.c.bf16 %v243_v39, %v241_v38  ;;  %v242_v43 = vld [vmem:[%s578_s4 + $0x70] sm:$0xff]  ;;  %v245_v45 = vld [vmem:[%s578_s4 + $0x88] sm:$0xff]  ;;  %v244_v46 = vld [vmem:[%s578_s4 + $0x80] sm:$0xff]  ;;  %s225_s11 = scalar_lea.vmem %s619_s3, %s414_s8 }
  0x29   : > { %v433_v44 = vpack.c.bf16 %v242_v43, %v240_v42 }
  0x2b   : > { %426 = vmatpush1.bf16.msra.mxu0 %v425_v34 }
  0x2c   : > { %428 = vmatprep.subr.bf16.mxu0 %v427_v35 }
  0x2f   : > { %430 = vmatpush1.bf16.msra.mxu0 %v429_v40 }
  0x30   : > { %432 = vmatprep.subr.bf16.mxu0 %v431_v41 }
  0x33   : > { %434 = vmatpush1.bf16.msra.mxu0 %v433_v44 }
  0x34   : > { %272 = vmatprep.subr.mxu0 %v245_v45 }
  0x37   : > { %273 = vmatpush1.msra.mxu0 %v244_v46 }
  0x38   : > { %415 = vmatmul.mubr.msk.f32.vlgmr.msra.gmra.mrb[0].mxu0 %vm252_vm0, %v227_v47 }
  0x9f   : > { %v250_v48 = vpop.permute.xlu0 %249 }
 0x10b   : > { %v322_v49 = vpop.f32.mrb[0].mxu0 }
 0x10c   : > { %v323_v50 = vadd.f32 %v322_v49, %v250_v48  ;;  %v324_v51 = vpop.f32.mrb[1].mxu0 }
 0x10d   : > { %v325_v52 = vadd.f32 %v324_v51, %v250_v48 }
 0x10e   : > { %v327_v53 = vsub.f32 0.0, %v323_v50 }
 0x10f   : > { %v328_v54 = vsub.f32 0.0, %v325_v52 }
 0x110   : > { %v329_v55 = vmul.f32 1.442695, %v327_v53 }
 0x111   : > { %v331_v56 = vmul.f32 1.442695, %v328_v54 }
 0x112   : > { %464 = vpow2.f32 %v329_v55 }
 0x113   : > { %466 = vpow2.f32 %v331_v56 }
 0x11c   : > { %v465_v57 = vpop.eup %464 }
 0x11d   : > { %v467_v58 = vpop.eup %466  ;;  %v333_v59 = vadd.f32 1.0, %v465_v57 }
 0x11e   : > { %v334_v60 = vadd.f32 1.0, %v467_v58 }
 0x11f   : > { %468 = vrcp.f32 %v333_v59 }
 0x120   : > { %470 = vrcp.f32 %v334_v60 }
 0x129   : > { %v469_v61 = vpop.eup %468 }
 0x12a   : > { %v471_v62 = vpop.eup %470 }
 0x12b   : > { %v341_v63 = vcombine.low %v469_v61, %v471_v62 }
 0x12d   : > { %343 = vst [vmem:[%s225_s11] sm:$0x77] %v341_v63 }
 0x12e PF: > { %p10_p9 = scmp.ge.s32.totalorder %s535_s16, 4   ;;  %s620_s12 = smov %s490_s13 }
 0x12f   : > { %s621_s13 = smov %s544_s19  ;;  %s622_s14 = smov %s535_s16 }
 0x130   :  { %12 = sbr.rel (!%p10_p9) target bundleno = 2 (0x2), region = 90 }

</bundles_post_ra>
